<compile_context>
chip_gen: v7x
topology: tpu7x:2x2x1
jax: 0.10.0
libtpu: 0.0.40
codegen_flags: <defaults>
</compile_context>

<pallas_src>
import jax
import jax.numpy as jnp
from jax.experimental import pallas as pl
from jax.experimental.pallas import tpu as pltpu

HID = 64        # self.hid_dim
GNN_OUT = 9     # self.gnn_out
E_H = 32        # edge_mlp hidden
E_OUT = 30      # edge_mlp out
OUT_DIM = 1     # self.out_dim


# ----------------------------- Pallas kernel --------------------------------
def _stgrf_kernel(rain_ref, feat_ref,
                  gsrc_ref, gtgt_ref, scat_ref,
                  cdirec_ref, i3d_ref, wind_ref,
                  we1st_ref, we1w_ref, eb1_ref,
                  we2_ref, be2_ref, wn_ref, bn_ref,
                  wxg_ref, wxx_ref, whh_ref, gb_ref,
                  wo_ref, bo_ref,
                  pred_ref,
                  h_scr, xn_scr):
    t = pl.program_id(1)

    # --- init hidden state and first xn (rain_hist[:, -1]) at the first timestep ---
    @pl.when(t == 0)
    def _init():
        h_scr[...] = jnp.zeros_like(h_scr)
        xn_scr[...] = rain_ref[0]                         # (N, 1)

    xn = xn_scr[...]                                      # (N, 1)  f32
    feat = feat_ref[0, 0]                                 # (N, in_dim-1) f32
    x = jnp.concatenate([xn, feat], axis=-1)              # (N, in_dim) f32
    x_bf = x.astype(jnp.bfloat16)

    # --- GraphGNN: gather via dense one-hot matmuls (bf16 operands, f32 accumulate) ---
    node_src = jnp.dot(gsrc_ref[...], x_bf, preferred_element_type=jnp.float32)  # (E, in_dim)
    node_tgt = jnp.dot(gtgt_ref[...], x_bf, preferred_element_type=jnp.float32)  # (E, in_dim)

    # wind de-normalization + edge weight (all f32 on the VPU/EUP)
    wind_mean = wind_ref[0:1, :]                          # (1, 2)
    wind_std = wind_ref[1:2, :]                           # (1, 2)
    src_wind = node_src[:, -2:] * wind_std + wind_mean    # (E, 2)
    src_speed = src_wind[:, 0:1]                          # (E, 1)
    src_direc = src_wind[:, 1:2]                          # (E, 1)
    theta = jnp.abs(cdirec_ref[...] - src_direc)          # (E, 1)
    # NOTE: matches the PyTorch reference exactly: torch.cos(theta * 360 / 16),
    # theta in degrees (no pi/180 conversion in the reference either).
    edge_weight = jnp.maximum(
        src_speed * jnp.cos(theta * (360.0 / 16.0)) * i3d_ref[...], 0.0)   # (E, 1)

    # edge MLP layer 1 as partial matmuls (no lane concat); attr@W + b folded into eb1.
    pre1 = (jnp.dot(node_src.astype(jnp.bfloat16), we1st_ref[0],
                    preferred_element_type=jnp.float32)
            + jnp.dot(node_tgt.astype(jnp.bfloat16), we1st_ref[1],
                      preferred_element_type=jnp.float32)
            + edge_weight * we1w_ref[...]                 # (E,1) * (1,E_H) broadcast
            + eb1_ref[...])                               # edge_attr_norm @ W_attr + be1
    e1 = jax.nn.sigmoid(pre1)                             # (E, E_H) f32
    e2 = jax.nn.sigmoid(
        jnp.dot(e1.astype(jnp.bfloat16), we2_ref[...],
                preferred_element_type=jnp.float32) + be2_ref[...])        # (E, E_OUT)

    # scatter_add(out, tgt) - scatter_add(out, src)  ==  (G_tgt - G_src)^T @ out
    agg = jnp.dot(scat_ref[...], e2.astype(jnp.bfloat16),
                  preferred_element_type=jnp.float32)     # (N, E_OUT)
    gnn = jax.nn.sigmoid(
        jnp.dot(agg.astype(jnp.bfloat16), wn_ref[...],
                preferred_element_type=jnp.float32) + bn_ref[...])         # (N, GNN_OUT)

    # --- GRU cell (PM2.5-GNN custom cell: hy = n + z * (h - n)) ---
    h = h_scr[...]                                        # (N, HID) f32
    h_bf = h.astype(jnp.bfloat16)
    gnn_bf = gnn.astype(jnp.bfloat16)

    def gate_x(g):                                        # gru_in = cat([gnn, x])
        return (jnp.dot(gnn_bf, wxg_ref[g], preferred_element_type=jnp.float32)
                + jnp.dot(x_bf, wxx_ref[g], preferred_element_type=jnp.float32))

    def gate_h(g):
        return jnp.dot(h_bf, whh_ref[g], preferred_element_type=jnp.float32)

    resetgate = jax.nn.sigmoid(gate_x(0) + gate_h(0) + gb_ref[0:1, :])
    inputgate = jax.nn.sigmoid(gate_x(1) + gate_h(1) + gb_ref[1:2, :])
    newgate = jnp.tanh(gate_x(2) + gb_ref[2:3, :]
                       + resetgate * (gate_h(2) + gb_ref[3:4, :]))
    hy = newgate + inputgate * (h - newgate)              # (N, HID) f32
    h_scr[...] = hy

    # --- fc_out; prediction feeds back as next step's xn ---
    pred = jnp.dot(hy, wo_ref[...], preferred_element_type=jnp.float32) + bo_ref[...]
    xn_scr[...] = pred
    pred_ref[0, 0] = pred


# ----------------------------- wrapper ---------------------------------------
_CONST_KEYS = ("g_src", "g_tgt", "scat", "city_direc", "inv3dist", "wind_ms",
               "we1_st", "we1_w", "ebias1", "we2", "be2", "wn", "bn",
               "wxg", "wxx", "whh", "gbias", "wo", "bo")


def _const_spec(shape):
    nd = len(shape)
    return pl.BlockSpec(shape, lambda b, t, _nd=nd: (0,) * _nd)


def stgrf_gru_forward(rain_hist, feature, kin, hist_len, pred_len):
    """rain_hist: (B, hist_len, N, 1); feature: (B, hist_len+pred_len, N, in_dim-1).

    Returns predictions of shape (B, pred_len, N, 1).
    """
    B, _, N, _ = rain_hist.shape
    rain_last = rain_hist[:, -1].astype(jnp.float32)                      # (B, N, 1)
    feat_pred = feature[:, hist_len:hist_len + pred_len].astype(jnp.float32)  # (B,T,N,F-1)
    fdim = feat_pred.shape[-1]
    consts = [kin[k] for k in _CONST_KEYS]

    in_specs = [
        pl.BlockSpec((1, N, 1), lambda b, t: (b, 0, 0)),                  # rain_last
        pl.BlockSpec((1, 1, N, fdim), lambda b, t: (b, t, 0, 0)),         # feature[t]
    ] + [_const_spec(c.shape) for c in consts]

    out_shape = jax.ShapeDtypeStruct((B, pred_len, N, OUT_DIM), jnp.float32)
    out_spec = pl.BlockSpec((1, 1, N, OUT_DIM), lambda b, t: (b, t, 0, 0))

    return pl.pallas_call(
        _stgrf_kernel,
        out_shape=out_shape,
        grid=(B, pred_len),
        in_specs=in_specs,
        out_specs=out_spec,
        scratch_shapes=[pltpu.VMEM((N, HID), jnp.float32),      # hidden state h
                        pltpu.VMEM((N, OUT_DIM), jnp.float32)], # fed-back prediction xn
        compiler_params=pltpu.CompilerParams(
            dimension_semantics=("parallel", "arbitrary"),
            vmem_limit_bytes=32 * 1024 * 1024),
    )(rain_last, feat_pred, *consts)


# ----------------------------- parameter / graph setup ----------------------
def make_params(key, in_dim):
    """PyTorch-equivalent parameters; Linear weights stored already transposed (in, out)."""
    ks = jax.random.split(key, 12)
    scale = 0.1
    edge_in = in_dim * 2 + 2 + 1
    gru_in = in_dim + GNN_OUT

    def w(k, shape):
        return jax.random.normal(k, shape, jnp.float32) * scale

    # NOTE: fc_in is declared in the PyTorch module but never used in forward(); omitted.
    return {
        "we1": w(ks[0], (edge_in, E_H)),    "be1": w(ks[1], (E_H,)),
        "we2": w(ks[2], (E_H, E_OUT)),      "be2": w(ks[3], (E_OUT,)),
        "wn":  w(ks[4], (E_OUT, GNN_OUT)),  "bn":  w(ks[5], (GNN_OUT,)),
        "wx":  w(ks[6], (gru_in, 3 * HID)), "bx":  w(ks[7], (3 * HID,)),
        "wh":  w(ks[8], (HID, 3 * HID)),    "bh":  w(ks[9], (3 * HID,)),
        "wo":  w(ks[10], (HID, OUT_DIM)),   "bo":  w(ks[11], (OUT_DIM,)),
    }


def prepare_kernel_inputs(params, edge_index, edge_attr, wind_mean, wind_std,
                          city_num, in_dim):
    """Host-side re-layout: split/fuse weights, fold constant terms, cast matmul
    operands to bf16 (one-hot / ±1 matrices are exact in bf16)."""
    f32, bf16 = jnp.float32, jnp.bfloat16
    edge_src, edge_tgt = edge_index[0], edge_index[1]

    g_src = jax.nn.one_hot(edge_src, city_num, dtype=f32)          # (E, N)
    g_tgt = jax.nn.one_hot(edge_tgt, city_num, dtype=f32)          # (E, N)
    # scatter_add(out, tgt) + scatter_add(-out, src)  ==  (G_tgt - G_src)^T @ out
    scat = (g_tgt - g_src).T                                       # (N, E)

    edge_attr = edge_attr.astype(f32)
    mean = jnp.mean(edge_attr, axis=0)
    std = jnp.std(edge_attr, axis=0, ddof=1)                       # torch.std -> unbiased
    edge_attr_norm = (edge_attr - mean) / std                      # (E, 2)

    # Split edge_mlp layer-1 weights by input block of cat([src, tgt, attr, edge_w]).
    we1 = params["we1"]
    we1_src = we1[0:in_dim]
    we1_tgt = we1[in_dim:2 * in_dim]
    we1_attr = we1[2 * in_dim:2 * in_dim + 2]
    we1_w = we1[2 * in_dim + 2:2 * in_dim + 3]                     # (1, E_H)
    # Constant term edge_attr_norm @ W_attr + be1 folded into a per-edge bias.
    ebias1 = edge_attr_norm @ we1_attr + params["be1"][None, :]    # (E, E_H)

    # GRU: split by gate (r, i, n) and by input block (gnn | x); fuse r/i biases.
    H = HID
    wx, wh, bx, bh = params["wx"], params["wh"], params["bx"], params["bh"]
    wxg = jnp.stack([wx[:GNN_OUT, g * H:(g + 1) * H] for g in range(3)], 0)   # (3, GNN_OUT, H)
    wxx = jnp.stack([wx[GNN_OUT:, g * H:(g + 1) * H] for g in range(3)], 0)   # (3, in_dim, H)
    whh = jnp.stack([wh[:, g * H:(g + 1) * H] for g in range(3)], 0)          # (3, H, H)
    gbias = jnp.stack([bx[0:H] + bh[0:H],
                       bx[H:2 * H] + bh[H:2 * H],
                       bx[2 * H:3 * H],
                       bh[2 * H:3 * H]], 0)                                   # (4, H)

    return {
        "g_src": g_src.astype(bf16),
        "g_tgt": g_tgt.astype(bf16),
        "scat": scat.astype(bf16),
        "city_direc": edge_attr[:, 1:2],                           # (E, 1) f32
        "inv3dist": 3.0 / edge_attr[:, 0:1],                       # (E, 1) f32
        "wind_ms": jnp.stack([wind_mean, wind_std], 0).astype(f32),  # (2, 2)
        "we1_st": jnp.stack([we1_src, we1_tgt], 0).astype(bf16),   # (2, in_dim, E_H)
        "we1_w": we1_w.astype(f32),                                # (1, E_H)
        "ebias1": ebias1.astype(f32),                              # (E, E_H)
        "we2": params["we2"].astype(bf16),
        "be2": params["be2"][None, :].astype(f32),
        "wn": params["wn"].astype(bf16),
        "bn": params["bn"][None, :].astype(f32),
        "wxg": wxg.astype(bf16),
        "wxx": wxx.astype(bf16),
        "whh": whh.astype(bf16),
        "gbias": gbias.astype(f32),
        "wo": params["wo"].astype(f32),
        "bo": params["bo"][None, :].astype(f32),
    }


# ----------------------------- main ------------------------------------------
if __name__ == "__main__":
    key = jax.random.PRNGKey(0)
    B, N, IN_DIM = 2, 16, 4          # batch, city_num, in_dim (last 2 feats = wind speed/direc)
    HIST_LEN, PRED_LEN = 4, 3
    E = 32                           # number of directed edges

    k = jax.random.split(key, 10)
    edge_src = jax.random.randint(k[0], (E,), 0, N)
    edge_tgt = jax.random.randint(k[1], (E,), 0, N)
    edge_index = jnp.stack([edge_src, edge_tgt], axis=0)                         # (2, E)
    edge_dist = jax.random.uniform(k[2], (E,), jnp.float32, 1.0, 10.0)
    edge_direc = jax.random.uniform(k[3], (E,), jnp.float32, 0.0, 360.0)
    edge_attr = jnp.stack([edge_dist, edge_direc], axis=-1)                      # (E, 2)
    wind_mean = jnp.array([2.0, 180.0], jnp.float32)
    wind_std = jnp.array([1.5, 90.0], jnp.float32)

    rain_hist = jax.random.uniform(k[4], (B, HIST_LEN, N, 1), jnp.float32)
    feature = jax.random.uniform(k[5], (B, HIST_LEN + PRED_LEN, N, IN_DIM - 1), jnp.float32)

    params = make_params(k[6], IN_DIM)
    kin = prepare_kernel_inputs(params, edge_index, edge_attr, wind_mean, wind_std,
                                N, IN_DIM)

    fwd = jax.jit(lambda rh, ft: stgrf_gru_forward(rh, ft, kin, HIST_LEN, PRED_LEN))
    out = fwd(rain_hist, feature)
    out = jax.block_until_ready(out)
    assert out.shape == (B, PRED_LEN, N, 1), out.shape
    assert bool(jnp.all(jnp.isfinite(out)))
    print("KERNEL_OK")
</pallas_src>

<mosaic_0001>
module attributes {stable_mosaic.version = 11 : i64} {
  func.func @_stgrf_kernel(%arg0: i32, %arg1: i32, %arg2: memref<1x16x1xf32, #tpu.memory_space<vmem>>, %arg3: memref<1x1x16x3xf32, #tpu.memory_space<vmem>>, %arg4: memref<32x16xbf16, #tpu.memory_space<vmem>>, %arg5: memref<32x16xbf16, #tpu.memory_space<vmem>>, %arg6: memref<16x32xbf16, #tpu.memory_space<vmem>>, %arg7: memref<32x1xf32, #tpu.memory_space<vmem>>, %arg8: memref<32x1xf32, #tpu.memory_space<vmem>>, %arg9: memref<2x2xf32, #tpu.memory_space<vmem>>, %arg10: memref<2x4x32xbf16, #tpu.memory_space<vmem>>, %arg11: memref<1x32xf32, #tpu.memory_space<vmem>>, %arg12: memref<32x32xf32, #tpu.memory_space<vmem>>, %arg13: memref<32x30xbf16, #tpu.memory_space<vmem>>, %arg14: memref<1x30xf32, #tpu.memory_space<vmem>>, %arg15: memref<30x9xbf16, #tpu.memory_space<vmem>>, %arg16: memref<1x9xf32, #tpu.memory_space<vmem>>, %arg17: memref<3x9x64xbf16, #tpu.memory_space<vmem>>, %arg18: memref<3x4x64xbf16, #tpu.memory_space<vmem>>, %arg19: memref<3x64x64xbf16, #tpu.memory_space<vmem>>, %arg20: memref<4x64xf32, #tpu.memory_space<vmem>>, %arg21: memref<64x1xf32, #tpu.memory_space<vmem>>, %arg22: memref<1x1xf32, #tpu.memory_space<vmem>>, %arg23: memref<1x1x16x1xf32, #tpu.memory_space<vmem>>, %arg24: memref<16x64xf32, #tpu.memory_space<vmem>>, %arg25: memref<16x1xf32, #tpu.memory_space<vmem>>) attributes {dimension_semantics = [#tpu.dimension_semantics<parallel>, #tpu.dimension_semantics<arbitrary>], iteration_bounds = array<i64: 2, 3>, scalar_prefetch = 0 : i64, scratch_operands = 2 : i64, tpu.core_type = #tpu.core_type<tc>, window_params = [{transform_indices = @transform_0, window_bounds = array<i64: 1, 16, 1>}, {transform_indices = @transform_1, window_bounds = array<i64: 1, 1, 16, 3>}, {pipeline_mode = #tpu.pipeline_mode<synchronous>, transform_indices = @transform_2, window_bounds = array<i64: 32, 16>}, {pipeline_mode = #tpu.pipeline_mode<synchronous>, transform_indices = @transform_3, window_bounds = array<i64: 32, 16>}, {pipeline_mode = #tpu.pipeline_mode<synchronous>, transform_indices = @transform_4, window_bounds = array<i64: 16, 32>}, {pipeline_mode = #tpu.pipeline_mode<synchronous>, transform_indices = @transform_5, window_bounds = array<i64: 32, 1>}, {pipeline_mode = #tpu.pipeline_mode<synchronous>, transform_indices = @transform_6, window_bounds = array<i64: 32, 1>}, {pipeline_mode = #tpu.pipeline_mode<synchronous>, transform_indices = @transform_7, window_bounds = array<i64: 2, 2>}, {pipeline_mode = #tpu.pipeline_mode<synchronous>, transform_indices = @transform_8, window_bounds = array<i64: 2, 4, 32>}, {pipeline_mode = #tpu.pipeline_mode<synchronous>, transform_indices = @transform_9, window_bounds = array<i64: 1, 32>}, {pipeline_mode = #tpu.pipeline_mode<synchronous>, transform_indices = @transform_10, window_bounds = array<i64: 32, 32>}, {pipeline_mode = #tpu.pipeline_mode<synchronous>, transform_indices = @transform_11, window_bounds = array<i64: 32, 30>}, {pipeline_mode = #tpu.pipeline_mode<synchronous>, transform_indices = @transform_12, window_bounds = array<i64: 1, 30>}, {pipeline_mode = #tpu.pipeline_mode<synchronous>, transform_indices = @transform_13, window_bounds = array<i64: 30, 9>}, {pipeline_mode = #tpu.pipeline_mode<synchronous>, transform_indices = @transform_14, window_bounds = array<i64: 1, 9>}, {pipeline_mode = #tpu.pipeline_mode<synchronous>, transform_indices = @transform_15, window_bounds = array<i64: 3, 9, 64>}, {pipeline_mode = #tpu.pipeline_mode<synchronous>, transform_indices = @transform_16, window_bounds = array<i64: 3, 4, 64>}, {pipeline_mode = #tpu.pipeline_mode<synchronous>, transform_indices = @transform_17, window_bounds = array<i64: 3, 64, 64>}, {pipeline_mode = #tpu.pipeline_mode<synchronous>, transform_indices = @transform_18, window_bounds = array<i64: 4, 64>}, {pipeline_mode = #tpu.pipeline_mode<synchronous>, transform_indices = @transform_19, window_bounds = array<i64: 64, 1>}, {pipeline_mode = #tpu.pipeline_mode<synchronous>, transform_indices = @transform_20, window_bounds = array<i64: 1, 1>}, {transform_indices = @transform_21, window_bounds = array<i64: 1, 1, 16, 1>}]} {
    %c0_i32 = arith.constant 0 : i32
    %0 = arith.cmpi eq, %arg1, %c0_i32 : i32
    %1 = arith.extui %0 : i1 to i32
    %c0_i32_0 = arith.constant 0 : i32
    %2 = arith.cmpi ne, %1, %c0_i32_0 : i32
    scf.if %2 {
      %cst_107 = arith.constant 0.000000e+00 : f32
      %151 = vector.broadcast %cst_107 : f32 to vector<16x64xf32>
      %c0_108 = arith.constant 0 : index
      %c0_109 = arith.constant 0 : index
      %152 = vector.load %arg24[%c0_108, %c0_109] : memref<16x64xf32, #tpu.memory_space<vmem>>, vector<16x64xf32>
      tpu.vector_store %arg24[%c0_108, %c0_109], %151 {strides = array<i32>} : memref<16x64xf32, #tpu.memory_space<vmem>>, vector<16x64xf32>,
      %c0_110 = arith.constant 0 : index
      %c0_111 = arith.constant 0 : index
      %c0_112 = arith.constant 0 : index
      %153 = vector.load %arg2[%c0_110, %c0_111, %c0_112] : memref<1x16x1xf32, #tpu.memory_space<vmem>>, vector<1x16x1xf32>
      %154 = vector.shape_cast %153 : vector<1x16x1xf32> to vector<16x1xf32>
      %c0_113 = arith.constant 0 : index
      %c0_114 = arith.constant 0 : index
      %155 = vector.load %arg25[%c0_113, %c0_114] : memref<16x1xf32, #tpu.memory_space<vmem>>, vector<16x1xf32>
      tpu.vector_store %arg25[%c0_113, %c0_114], %154 {strides = array<i32>} : memref<16x1xf32, #tpu.memory_space<vmem>>, vector<16x1xf32>,
    } else {
    }
    %c0 = arith.constant 0 : index
    %c0_1 = arith.constant 0 : index
    %3 = vector.load %arg25[%c0, %c0_1] : memref<16x1xf32, #tpu.memory_space<vmem>>, vector<16x1xf32>
    %c0_2 = arith.constant 0 : index
    %c0_3 = arith.constant 0 : index
    %c0_4 = arith.constant 0 : index
    %c0_5 = arith.constant 0 : index
    %4 = vector.load %arg3[%c0_2, %c0_3, %c0_4, %c0_5] : memref<1x1x16x3xf32, #tpu.memory_space<vmem>>, vector<1x1x16x3xf32>
    %5 = vector.shape_cast %4 : vector<1x1x16x3xf32> to vector<16x3xf32>
    %6 = tpu.concatenate %3, %5 in 1 : vector<16x1xf32>, vector<16x3xf32> -> vector<16x4xf32>
    %7 = arith.truncf %6 : vector<16x4xf32> to vector<16x4xbf16>
    %c0_6 = arith.constant 0 : index
    %c0_7 = arith.constant 0 : index
    %8 = vector.load %arg4[%c0_6, %c0_7] : memref<32x16xbf16, #tpu.memory_space<vmem>>, vector<32x16xbf16>
    %cst = arith.constant dense<0.000000e+00> : vector<32x4xf32>
    %9 = tpu.matmul %8, %7, %cst {dimension_numbers = #tpu.dot_dimension_numbers<[1], [0], [0], [1], [0, 0, 1, 1], [], []>} : vector<32x16xbf16>, vector<16x4xbf16>, vector<32x4xf32> -> vector<32x4xf32>
    %c0_8 = arith.constant 0 : index
    %c0_9 = arith.constant 0 : index
    %10 = vector.load %arg5[%c0_8, %c0_9] : memref<32x16xbf16, #tpu.memory_space<vmem>>, vector<32x16xbf16>
    %cst_10 = arith.constant dense<0.000000e+00> : vector<32x4xf32>
    %11 = tpu.matmul %10, %7, %cst_10 {dimension_numbers = #tpu.dot_dimension_numbers<[1], [0], [0], [1], [0, 0, 1, 1], [], []>} : vector<32x16xbf16>, vector<16x4xbf16>, vector<32x4xf32> -> vector<32x4xf32>
    %c0_11 = arith.constant 0 : index
    %c0_12 = arith.constant 0 : index
    %12 = vector.load %arg9[%c0_11, %c0_12] : memref<2x2xf32, #tpu.memory_space<vmem>>, vector<1x2xf32>
    %c1 = arith.constant 1 : index
    %c0_13 = arith.constant 0 : index
    %13 = vector.load %arg9[%c1, %c0_13] : memref<2x2xf32, #tpu.memory_space<vmem>>, vector<1x2xf32>
    %14 = vector.extract_strided_slice %9 {offsets = [0, 2], sizes = [32, 2], strides = [1, 1]} : vector<32x4xf32> to vector<32x2xf32>
    %15 = vector.broadcast %13 : vector<1x2xf32> to vector<32x2xf32>
    %16 = arith.mulf %14, %15 : vector<32x2xf32>
    %17 = vector.broadcast %12 : vector<1x2xf32> to vector<32x2xf32>
    %18 = arith.addf %16, %17 : vector<32x2xf32>
    %19 = vector.extract_strided_slice %18 {offsets = [0, 0], sizes = [32, 1], strides = [1, 1]} : vector<32x2xf32> to vector<32x1xf32>
    %20 = vector.extract_strided_slice %18 {offsets = [0, 1], sizes = [32, 1], strides = [1, 1]} : vector<32x2xf32> to vector<32x1xf32>
    %c0_14 = arith.constant 0 : index
    %c0_15 = arith.constant 0 : index
    %21 = vector.load %arg7[%c0_14, %c0_15] : memref<32x1xf32, #tpu.memory_space<vmem>>, vector<32x1xf32>
    %22 = arith.subf %21, %20 : vector<32x1xf32>
    %23 = math.absf %22 : vector<32x1xf32>
    %cst_16 = arith.constant 2.250000e+01 : f32
    %24 = vector.broadcast %cst_16 : f32 to vector<32x1xf32>
    %25 = arith.mulf %23, %24 : vector<32x1xf32>
    %26 = math.cos %25 : vector<32x1xf32>
    %27 = arith.mulf %19, %26 : vector<32x1xf32>
    %c0_17 = arith.constant 0 : index
    %c0_18 = arith.constant 0 : index
    %28 = vector.load %arg8[%c0_17, %c0_18] : memref<32x1xf32, #tpu.memory_space<vmem>>, vector<32x1xf32>
    %29 = arith.mulf %27, %28 : vector<32x1xf32>
    %cst_19 = arith.constant 0.000000e+00 : f32
    %30 = vector.broadcast %cst_19 : f32 to vector<32x1xf32>
    %31 = arith.maximumf %29, %30 : vector<32x1xf32>
    %32 = arith.truncf %9 : vector<32x4xf32> to vector<32x4xbf16>
    %c0_20 = arith.constant 0 : index
    %c0_21 = arith.constant 0 : index
    %c0_22 = arith.constant 0 : index
    %33 = vector.load %arg10[%c0_20, %c0_21, %c0_22] : memref<2x4x32xbf16, #tpu.memory_space<vmem>>, vector<1x4x32xbf16>
    %34 = vector.shape_cast %33 : vector<1x4x32xbf16> to vector<4x32xbf16>
    %cst_23 = arith.constant dense<0.000000e+00> : vector<32x32xf32>
    %35 = tpu.matmul %32, %34, %cst_23 {dimension_numbers = #tpu.dot_dimension_numbers<[1], [0], [0], [1], [0, 0, 1, 1], [], []>} : vector<32x4xbf16>, vector<4x32xbf16>, vector<32x32xf32> -> vector<32x32xf32>
    %36 = arith.truncf %11 : vector<32x4xf32> to vector<32x4xbf16>
    %c1_24 = arith.constant 1 : index
    %c0_25 = arith.constant 0 : index
    %c0_26 = arith.constant 0 : index
    %37 = vector.load %arg10[%c1_24, %c0_25, %c0_26] : memref<2x4x32xbf16, #tpu.memory_space<vmem>>, vector<1x4x32xbf16>
    %38 = vector.shape_cast %37 : vector<1x4x32xbf16> to vector<4x32xbf16>
    %cst_27 = arith.constant dense<0.000000e+00> : vector<32x32xf32>
    %39 = tpu.matmul %36, %38, %cst_27 {dimension_numbers = #tpu.dot_dimension_numbers<[1], [0], [0], [1], [0, 0, 1, 1], [], []>} : vector<32x4xbf16>, vector<4x32xbf16>, vector<32x32xf32> -> vector<32x32xf32>
    %40 = arith.addf %35, %39 : vector<32x32xf32>
    %c0_28 = arith.constant 0 : index
    %c0_29 = arith.constant 0 : index
    %41 = vector.load %arg11[%c0_28, %c0_29] : memref<1x32xf32, #tpu.memory_space<vmem>>, vector<1x32xf32>
    %42 = vector.broadcast %31 : vector<32x1xf32> to vector<32x32xf32>
    %43 = vector.broadcast %41 : vector<1x32xf32> to vector<32x32xf32>
    %44 = arith.mulf %42, %43 : vector<32x32xf32>
    %45 = arith.addf %40, %44 : vector<32x32xf32>
    %c0_30 = arith.constant 0 : index
    %c0_31 = arith.constant 0 : index
    %46 = vector.load %arg12[%c0_30, %c0_31] : memref<32x32xf32, #tpu.memory_space<vmem>>, vector<32x32xf32>
    %47 = arith.addf %45, %46 : vector<32x32xf32>
    %48 = arith.negf %47 : vector<32x32xf32>
    %49 = math.exp %48 : vector<32x32xf32>
    %cst_32 = arith.constant 1.000000e+00 : f32
    %50 = vector.broadcast %cst_32 : f32 to vector<32x32xf32>
    %51 = arith.addf %50, %49 : vector<32x32xf32>
    %52 = arith.divf %50, %51 : vector<32x32xf32>
    %53 = arith.truncf %52 : vector<32x32xf32> to vector<32x32xbf16>
    %c0_33 = arith.constant 0 : index
    %c0_34 = arith.constant 0 : index
    %54 = vector.load %arg13[%c0_33, %c0_34] : memref<32x30xbf16, #tpu.memory_space<vmem>>, vector<32x30xbf16>
    %cst_35 = arith.constant dense<0.000000e+00> : vector<32x30xf32>
    %55 = tpu.matmul %53, %54, %cst_35 {dimension_numbers = #tpu.dot_dimension_numbers<[1], [0], [0], [1], [0, 0, 1, 1], [], []>} : vector<32x32xbf16>, vector<32x30xbf16>, vector<32x30xf32> -> vector<32x30xf32>
    %c0_36 = arith.constant 0 : index
    %c0_37 = arith.constant 0 : index
    %56 = vector.load %arg14[%c0_36, %c0_37] : memref<1x30xf32, #tpu.memory_space<vmem>>, vector<1x30xf32>
    %57 = vector.broadcast %56 : vector<1x30xf32> to vector<32x30xf32>
    %58 = arith.addf %55, %57 : vector<32x30xf32>
    %59 = arith.negf %58 : vector<32x30xf32>
    %60 = math.exp %59 : vector<32x30xf32>
    %cst_38 = arith.constant 1.000000e+00 : f32
    %61 = vector.broadcast %cst_38 : f32 to vector<32x30xf32>
    %62 = arith.addf %61, %60 : vector<32x30xf32>
    %63 = arith.divf %61, %62 : vector<32x30xf32>
    %c0_39 = arith.constant 0 : index
    %c0_40 = arith.constant 0 : index
    %64 = vector.load %arg6[%c0_39, %c0_40] : memref<16x32xbf16, #tpu.memory_space<vmem>>, vector<16x32xbf16>
    %65 = arith.truncf %63 : vector<32x30xf32> to vector<32x30xbf16>
    %cst_41 = arith.constant dense<0.000000e+00> : vector<16x30xf32>
    %66 = tpu.matmul %64, %65, %cst_41 {dimension_numbers = #tpu.dot_dimension_numbers<[1], [0], [0], [1], [0, 0, 1, 1], [], []>} : vector<16x32xbf16>, vector<32x30xbf16>, vector<16x30xf32> -> vector<16x30xf32>
    %67 = arith.truncf %66 : vector<16x30xf32> to vector<16x30xbf16>
    %c0_42 = arith.constant 0 : index
    %c0_43 = arith.constant 0 : index
    %68 = vector.load %arg15[%c0_42, %c0_43] : memref<30x9xbf16, #tpu.memory_space<vmem>>, vector<30x9xbf16>
    %cst_44 = arith.constant dense<0.000000e+00> : vector<16x9xf32>
    %69 = tpu.matmul %67, %68, %cst_44 {dimension_numbers = #tpu.dot_dimension_numbers<[1], [0], [0], [1], [0, 0, 1, 1], [], []>} : vector<16x30xbf16>, vector<30x9xbf16>, vector<16x9xf32> -> vector<16x9xf32>
    %c0_45 = arith.constant 0 : index
    %c0_46 = arith.constant 0 : index
    %70 = vector.load %arg16[%c0_45, %c0_46] : memref<1x9xf32, #tpu.memory_space<vmem>>, vector<1x9xf32>
    %71 = vector.broadcast %70 : vector<1x9xf32> to vector<16x9xf32>
    %72 = arith.addf %69, %71 : vector<16x9xf32>
    %73 = arith.negf %72 : vector<16x9xf32>
    %74 = math.exp %73 : vector<16x9xf32>
    %cst_47 = arith.constant 1.000000e+00 : f32
    %75 = vector.broadcast %cst_47 : f32 to vector<16x9xf32>
    %76 = arith.addf %75, %74 : vector<16x9xf32>
    %77 = arith.divf %75, %76 : vector<16x9xf32>
    %c0_48 = arith.constant 0 : index
    %c0_49 = arith.constant 0 : index
    %78 = vector.load %arg24[%c0_48, %c0_49] : memref<16x64xf32, #tpu.memory_space<vmem>>, vector<16x64xf32>
    %79 = arith.truncf %78 : vector<16x64xf32> to vector<16x64xbf16>
    %80 = arith.truncf %77 : vector<16x9xf32> to vector<16x9xbf16>
    %c0_50 = arith.constant 0 : index
    %c0_51 = arith.constant 0 : index
    %c0_52 = arith.constant 0 : index
    %81 = vector.load %arg17[%c0_50, %c0_51, %c0_52] : memref<3x9x64xbf16, #tpu.memory_space<vmem>>, vector<1x9x64xbf16>
    %82 = vector.shape_cast %81 : vector<1x9x64xbf16> to vector<9x64xbf16>
    %cst_53 = arith.constant dense<0.000000e+00> : vector<16x64xf32>
    %83 = tpu.matmul %80, %82, %cst_53 {dimension_numbers = #tpu.dot_dimension_numbers<[1], [0], [0], [1], [0, 0, 1, 1], [], []>} : vector<16x9xbf16>, vector<9x64xbf16>, vector<16x64xf32> -> vector<16x64xf32>
    %c0_54 = arith.constant 0 : index
    %c0_55 = arith.constant 0 : index
    %c0_56 = arith.constant 0 : index
    %84 = vector.load %arg18[%c0_54, %c0_55, %c0_56] : memref<3x4x64xbf16, #tpu.memory_space<vmem>>, vector<1x4x64xbf16>
    %85 = vector.shape_cast %84 : vector<1x4x64xbf16> to vector<4x64xbf16>
    %cst_57 = arith.constant dense<0.000000e+00> : vector<16x64xf32>
    %86 = tpu.matmul %7, %85, %cst_57 {dimension_numbers = #tpu.dot_dimension_numbers<[1], [0], [0], [1], [0, 0, 1, 1], [], []>} : vector<16x4xbf16>, vector<4x64xbf16>, vector<16x64xf32> -> vector<16x64xf32>
    %87 = arith.addf %83, %86 : vector<16x64xf32>
    %c0_58 = arith.constant 0 : index
    %c0_59 = arith.constant 0 : index
    %c0_60 = arith.constant 0 : index
    %88 = vector.load %arg19[%c0_58, %c0_59, %c0_60] : memref<3x64x64xbf16, #tpu.memory_space<vmem>>, vector<1x64x64xbf16>
    %89 = vector.shape_cast %88 : vector<1x64x64xbf16> to vector<64x64xbf16>
    %cst_61 = arith.constant dense<0.000000e+00> : vector<16x64xf32>
    %90 = tpu.matmul %79, %89, %cst_61 {dimension_numbers = #tpu.dot_dimension_numbers<[1], [0], [0], [1], [0, 0, 1, 1], [], []>} : vector<16x64xbf16>, vector<64x64xbf16>, vector<16x64xf32> -> vector<16x64xf32>
    %91 = arith.addf %87, %90 : vector<16x64xf32>
    %c0_62 = arith.constant 0 : index
    %c0_63 = arith.constant 0 : index
    %92 = vector.load %arg20[%c0_62, %c0_63] : memref<4x64xf32, #tpu.memory_space<vmem>>, vector<1x64xf32>
    %93 = vector.broadcast %92 : vector<1x64xf32> to vector<16x64xf32>
    %94 = arith.addf %91, %93 : vector<16x64xf32>
    %95 = arith.negf %94 : vector<16x64xf32>
    %96 = math.exp %95 : vector<16x64xf32>
    %cst_64 = arith.constant 1.000000e+00 : f32
    %97 = vector.broadcast %cst_64 : f32 to vector<16x64xf32>
    %98 = arith.addf %97, %96 : vector<16x64xf32>
    %99 = arith.divf %97, %98 : vector<16x64xf32>
    %c1_65 = arith.constant 1 : index
    %c0_66 = arith.constant 0 : index
    %c0_67 = arith.constant 0 : index
    %100 = vector.load %arg17[%c1_65, %c0_66, %c0_67] : memref<3x9x64xbf16, #tpu.memory_space<vmem>>, vector<1x9x64xbf16>
    %101 = vector.shape_cast %100 : vector<1x9x64xbf16> to vector<9x64xbf16>
    %cst_68 = arith.constant dense<0.000000e+00> : vector<16x64xf32>
    %102 = tpu.matmul %80, %101, %cst_68 {dimension_numbers = #tpu.dot_dimension_numbers<[1], [0], [0], [1], [0, 0, 1, 1], [], []>} : vector<16x9xbf16>, vector<9x64xbf16>, vector<16x64xf32> -> vector<16x64xf32>
    %c1_69 = arith.constant 1 : index
    %c0_70 = arith.constant 0 : index
    %c0_71 = arith.constant 0 : index
    %103 = vector.load %arg18[%c1_69, %c0_70, %c0_71] : memref<3x4x64xbf16, #tpu.memory_space<vmem>>, vector<1x4x64xbf16>
    %104 = vector.shape_cast %103 : vector<1x4x64xbf16> to vector<4x64xbf16>
    %cst_72 = arith.constant dense<0.000000e+00> : vector<16x64xf32>
    %105 = tpu.matmul %7, %104, %cst_72 {dimension_numbers = #tpu.dot_dimension_numbers<[1], [0], [0], [1], [0, 0, 1, 1], [], []>} : vector<16x4xbf16>, vector<4x64xbf16>, vector<16x64xf32> -> vector<16x64xf32>
    %106 = arith.addf %102, %105 : vector<16x64xf32>
    %c1_73 = arith.constant 1 : index
    %c0_74 = arith.constant 0 : index
    %c0_75 = arith.constant 0 : index
    %107 = vector.load %arg19[%c1_73, %c0_74, %c0_75] : memref<3x64x64xbf16, #tpu.memory_space<vmem>>, vector<1x64x64xbf16>
    %108 = vector.shape_cast %107 : vector<1x64x64xbf16> to vector<64x64xbf16>
    %cst_76 = arith.constant dense<0.000000e+00> : vector<16x64xf32>
    %109 = tpu.matmul %79, %108, %cst_76 {dimension_numbers = #tpu.dot_dimension_numbers<[1], [0], [0], [1], [0, 0, 1, 1], [], []>} : vector<16x64xbf16>, vector<64x64xbf16>, vector<16x64xf32> -> vector<16x64xf32>
    %110 = arith.addf %106, %109 : vector<16x64xf32>
    %c1_77 = arith.constant 1 : index
    %c0_78 = arith.constant 0 : index
    %111 = vector.load %arg20[%c1_77, %c0_78] : memref<4x64xf32, #tpu.memory_space<vmem>>, vector<1x64xf32>
    %112 = vector.broadcast %111 : vector<1x64xf32> to vector<16x64xf32>
    %113 = arith.addf %110, %112 : vector<16x64xf32>
    %114 = arith.negf %113 : vector<16x64xf32>
    %115 = math.exp %114 : vector<16x64xf32>
    %cst_79 = arith.constant 1.000000e+00 : f32
    %116 = vector.broadcast %cst_79 : f32 to vector<16x64xf32>
    %117 = arith.addf %116, %115 : vector<16x64xf32>
    %118 = arith.divf %116, %117 : vector<16x64xf32>
    %c2 = arith.constant 2 : index
    %c0_80 = arith.constant 0 : index
    %c0_81 = arith.constant 0 : index
    %119 = vector.load %arg17[%c2, %c0_80, %c0_81] : memref<3x9x64xbf16, #tpu.memory_space<vmem>>, vector<1x9x64xbf16>
    %120 = vector.shape_cast %119 : vector<1x9x64xbf16> to vector<9x64xbf16>
    %cst_82 = arith.constant dense<0.000000e+00> : vector<16x64xf32>
    %121 = tpu.matmul %80, %120, %cst_82 {dimension_numbers = #tpu.dot_dimension_numbers<[1], [0], [0], [1], [0, 0, 1, 1], [], []>} : vector<16x9xbf16>, vector<9x64xbf16>, vector<16x64xf32> -> vector<16x64xf32>
    %c2_83 = arith.constant 2 : index
    %c0_84 = arith.constant 0 : index
    %c0_85 = arith.constant 0 : index
    %122 = vector.load %arg18[%c2_83, %c0_84, %c0_85] : memref<3x4x64xbf16, #tpu.memory_space<vmem>>, vector<1x4x64xbf16>
    %123 = vector.shape_cast %122 : vector<1x4x64xbf16> to vector<4x64xbf16>
    %cst_86 = arith.constant dense<0.000000e+00> : vector<16x64xf32>
    %124 = tpu.matmul %7, %123, %cst_86 {dimension_numbers = #tpu.dot_dimension_numbers<[1], [0], [0], [1], [0, 0, 1, 1], [], []>} : vector<16x4xbf16>, vector<4x64xbf16>, vector<16x64xf32> -> vector<16x64xf32>
    %125 = arith.addf %121, %124 : vector<16x64xf32>
    %c2_87 = arith.constant 2 : index
    %c0_88 = arith.constant 0 : index
    %126 = vector.load %arg20[%c2_87, %c0_88] : memref<4x64xf32, #tpu.memory_space<vmem>>, vector<1x64xf32>
    %127 = vector.broadcast %126 : vector<1x64xf32> to vector<16x64xf32>
    %128 = arith.addf %125, %127 : vector<16x64xf32>
    %c2_89 = arith.constant 2 : index
    %c0_90 = arith.constant 0 : index
    %c0_91 = arith.constant 0 : index
    %129 = vector.load %arg19[%c2_89, %c0_90, %c0_91] : memref<3x64x64xbf16, #tpu.memory_space<vmem>>, vector<1x64x64xbf16>
    %130 = vector.shape_cast %129 : vector<1x64x64xbf16> to vector<64x64xbf16>
    %cst_92 = arith.constant dense<0.000000e+00> : vector<16x64xf32>
    %131 = tpu.matmul %79, %130, %cst_92 {dimension_numbers = #tpu.dot_dimension_numbers<[1], [0], [0], [1], [0, 0, 1, 1], [], []>} : vector<16x64xbf16>, vector<64x64xbf16>, vector<16x64xf32> -> vector<16x64xf32>
    %c3 = arith.constant 3 : index
    %c0_93 = arith.constant 0 : index
    %132 = vector.load %arg20[%c3, %c0_93] : memref<4x64xf32, #tpu.memory_space<vmem>>, vector<1x64xf32>
    %133 = vector.broadcast %132 : vector<1x64xf32> to vector<16x64xf32>
    %134 = arith.addf %131, %133 : vector<16x64xf32>
    %135 = arith.mulf %99, %134 : vector<16x64xf32>
    %136 = arith.addf %128, %135 : vector<16x64xf32>
    %137 = math.tanh %136 : vector<16x64xf32>
    %138 = arith.subf %78, %137 : vector<16x64xf32>
    %139 = arith.mulf %118, %138 : vector<16x64xf32>
    %140 = arith.addf %137, %139 : vector<16x64xf32>
    %c0_94 = arith.constant 0 : index
    %c0_95 = arith.constant 0 : index
    %141 = vector.load %arg24[%c0_94, %c0_95] : memref<16x64xf32, #tpu.memory_space<vmem>>, vector<16x64xf32>
    tpu.vector_store %arg24[%c0_94, %c0_95], %140 {strides = array<i32>} : memref<16x64xf32, #tpu.memory_space<vmem>>, vector<16x64xf32>,
    %c0_96 = arith.constant 0 : index
    %c0_97 = arith.constant 0 : index
    %142 = vector.load %arg21[%c0_96, %c0_97] : memref<64x1xf32, #tpu.memory_space<vmem>>, vector<64x1xf32>
    %cst_98 = arith.constant dense<0.000000e+00> : vector<16x1xf32>
    %143 = tpu.matmul %140, %142, %cst_98 {dimension_numbers = #tpu.dot_dimension_numbers<[1], [0], [0], [1], [0, 0, 1, 1], [], []>} : vector<16x64xf32>, vector<64x1xf32>, vector<16x1xf32> -> vector<16x1xf32>
    %c0_99 = arith.constant 0 : index
    %c0_100 = arith.constant 0 : index
    %144 = vector.load %arg22[%c0_99, %c0_100] : memref<1x1xf32, #tpu.memory_space<vmem>>, vector<1x1xf32>
    %145 = vector.broadcast %144 : vector<1x1xf32> to vector<16x1xf32>
    %146 = arith.addf %143, %145 : vector<16x1xf32>
    %c0_101 = arith.constant 0 : index
    %c0_102 = arith.constant 0 : index
    %147 = vector.load %arg25[%c0_101, %c0_102] : memref<16x1xf32, #tpu.memory_space<vmem>>, vector<16x1xf32>
    tpu.vector_store %arg25[%c0_101, %c0_102], %146 {strides = array<i32>} : memref<16x1xf32, #tpu.memory_space<vmem>>, vector<16x1xf32>,
    %c0_103 = arith.constant 0 : index
    %c0_104 = arith.constant 0 : index
    %c0_105 = arith.constant 0 : index
    %c0_106 = arith.constant 0 : index
    %148 = vector.load %arg23[%c0_103, %c0_104, %c0_105, %c0_106] : memref<1x1x16x1xf32, #tpu.memory_space<vmem>>, vector<1x1x16x1xf32>
    %149 = vector.shape_cast %148 : vector<1x1x16x1xf32> to vector<16x1xf32>
    %150 = vector.shape_cast %146 : vector<16x1xf32> to vector<1x1x16x1xf32>
    tpu.vector_store %arg23[%c0_103, %c0_104, %c0_105, %c0_106], %150 {strides = array<i32>} : memref<1x1x16x1xf32, #tpu.memory_space<vmem>>, vector<1x1x16x1xf32>,
    return
  }
  func.func @transform_0(%arg0: i32, %arg1: i32) -> (i32, i32, i32) {
    %c0_i32 = arith.constant 0 : i32
    %c0_i32_0 = arith.constant 0 : i32
    %c0_i32_1 = arith.constant 0 : i32
    return %arg0, %c0_i32, %c0_i32_0 : i32, i32, i32
  }
  func.func @transform_1(%arg0: i32, %arg1: i32) -> (i32, i32, i32, i32) {
    %c0_i32 = arith.constant 0 : i32
    %c0_i32_0 = arith.constant 0 : i32
    %c0_i32_1 = arith.constant 0 : i32
    return %arg0, %arg1, %c0_i32, %c0_i32_0 : i32, i32, i32, i32
  }
  func.func @transform_2(%arg0: i32, %arg1: i32) -> (i32, i32) {
    %c0_i32 = arith.constant 0 : i32
    %c0_i32_0 = arith.constant 0 : i32
    %c0_i32_1 = arith.constant 0 : i32
    return %c0_i32, %c0_i32_0 : i32, i32
  }
  func.func @transform_3(%arg0: i32, %arg1: i32) -> (i32, i32) {
    %c0_i32 = arith.constant 0 : i32
    %c0_i32_0 = arith.constant 0 : i32
    %c0_i32_1 = arith.constant 0 : i32
    return %c0_i32, %c0_i32_0 : i32, i32
  }
  func.func @transform_4(%arg0: i32, %arg1: i32) -> (i32, i32) {
    %c0_i32 = arith.constant 0 : i32
    %c0_i32_0 = arith.constant 0 : i32
    %c0_i32_1 = arith.constant 0 : i32
    return %c0_i32, %c0_i32_0 : i32, i32
  }
  func.func @transform_5(%arg0: i32, %arg1: i32) -> (i32, i32) {
    %c0_i32 = arith.constant 0 : i32
    %c0_i32_0 = arith.constant 0 : i32
    %c0_i32_1 = arith.constant 0 : i32
    return %c0_i32, %c0_i32_0 : i32, i32
  }
  func.func @transform_6(%arg0: i32, %arg1: i32) -> (i32, i32) {
    %c0_i32 = arith.constant 0 : i32
    %c0_i32_0 = arith.constant 0 : i32
    %c0_i32_1 = arith.constant 0 : i32
    return %c0_i32, %c0_i32_0 : i32, i32
  }
  func.func @transform_7(%arg0: i32, %arg1: i32) -> (i32, i32) {
    %c0_i32 = arith.constant 0 : i32
    %c0_i32_0 = arith.constant 0 : i32
    %c0_i32_1 = arith.constant 0 : i32
    return %c0_i32, %c0_i32_0 : i32, i32
  }
  func.func @transform_8(%arg0: i32, %arg1: i32) -> (i32, i32, i32) {
    %c0_i32 = arith.constant 0 : i32
    %c0_i32_0 = arith.constant 0 : i32
    %c0_i32_1 = arith.constant 0 : i32
    %c0_i32_2 = arith.constant 0 : i32
    return %c0_i32, %c0_i32_0, %c0_i32_1 : i32, i32, i32
  }
  func.func @transform_9(%arg0: i32, %arg1: i32) -> (i32, i32) {
    %c0_i32 = arith.constant 0 : i32
    %c0_i32_0 = arith.constant 0 : i32
    %c0_i32_1 = arith.constant 0 : i32
    return %c0_i32, %c0_i32_0 : i32, i32
  }
  func.func @transform_10(%arg0: i32, %arg1: i32) -> (i32, i32) {
    %c0_i32 = arith.constant 0 : i32
    %c0_i32_0 = arith.constant 0 : i32
    %c0_i32_1 = arith.constant 0 : i32
    return %c0_i32, %c0_i32_0 : i32, i32
  }
  func.func @transform_11(%arg0: i32, %arg1: i32) -> (i32, i32) {
    %c0_i32 = arith.constant 0 : i32
    %c0_i32_0 = arith.constant 0 : i32
    %c0_i32_1 = arith.constant 0 : i32
    return %c0_i32, %c0_i32_0 : i32, i32
  }
  func.func @transform_12(%arg0: i32, %arg1: i32) -> (i32, i32) {
    %c0_i32 = arith.constant 0 : i32
    %c0_i32_0 = arith.constant 0 : i32
    %c0_i32_1 = arith.constant 0 : i32
    return %c0_i32, %c0_i32_0 : i32, i32
  }
  func.func @transform_13(%arg0: i32, %arg1: i32) -> (i32, i32) {
    %c0_i32 = arith.constant 0 : i32
    %c0_i32_0 = arith.constant 0 : i32
    %c0_i32_1 = arith.constant 0 : i32
    return %c0_i32, %c0_i32_0 : i32, i32
  }
  func.func @transform_14(%arg0: i32, %arg1: i32) -> (i32, i32) {
    %c0_i32 = arith.constant 0 : i32
    %c0_i32_0 = arith.constant 0 : i32
    %c0_i32_1 = arith.constant 0 : i32
    return %c0_i32, %c0_i32_0 : i32, i32
  }
  func.func @transform_15(%arg0: i32, %arg1: i32) -> (i32, i32, i32) {
    %c0_i32 = arith.constant 0 : i32
    %c0_i32_0 = arith.constant 0 : i32
    %c0_i32_1 = arith.constant 0 : i32
    %c0_i32_2 = arith.constant 0 : i32
    return %c0_i32, %c0_i32_0, %c0_i32_1 : i32, i32, i32
  }
  func.func @transform_16(%arg0: i32, %arg1: i32) -> (i32, i32, i32) {
    %c0_i32 = arith.constant 0 : i32
    %c0_i32_0 = arith.constant 0 : i32
    %c0_i32_1 = arith.constant 0 : i32
    %c0_i32_2 = arith.constant 0 : i32
    return %c0_i32, %c0_i32_0, %c0_i32_1 : i32, i32, i32
  }
  func.func @transform_17(%arg0: i32, %arg1: i32) -> (i32, i32, i32) {
    %c0_i32 = arith.constant 0 : i32
    %c0_i32_0 = arith.constant 0 : i32
    %c0_i32_1 = arith.constant 0 : i32
    %c0_i32_2 = arith.constant 0 : i32
    return %c0_i32, %c0_i32_0, %c0_i32_1 : i32, i32, i32
  }
  func.func @transform_18(%arg0: i32, %arg1: i32) -> (i32, i32) {
    %c0_i32 = arith.constant 0 : i32
    %c0_i32_0 = arith.constant 0 : i32
    %c0_i32_1 = arith.constant 0 : i32
    return %c0_i32, %c0_i32_0 : i32, i32
  }
  func.func @transform_19(%arg0: i32, %arg1: i32) -> (i32, i32) {
    %c0_i32 = arith.constant 0 : i32
    %c0_i32_0 = arith.constant 0 : i32
    %c0_i32_1 = arith.constant 0 : i32
    return %c0_i32, %c0_i32_0 : i32, i32
  }
  func.func @transform_20(%arg0: i32, %arg1: i32) -> (i32, i32) {
    %c0_i32 = arith.constant 0 : i32
    %c0_i32_0 = arith.constant 0 : i32
    %c0_i32_1 = arith.constant 0 : i32
    return %c0_i32, %c0_i32_0 : i32, i32
  }
  func.func @transform_21(%arg0: i32, %arg1: i32) -> (i32, i32, i32, i32) {
    %c0_i32 = arith.constant 0 : i32
    %c0_i32_0 = arith.constant 0 : i32
    %c0_i32_1 = arith.constant 0 : i32
    return %arg0, %arg1, %c0_i32, %c0_i32_0 : i32, i32, i32, i32
  }
}

</mosaic_0001>

<bundles_post_ra>
// kernel: _lambda_.1
= control target key start
LH: loop header
LB: loop body
LE: loop exit
PB: predicated region body
PF: predicated region fallthrough
CT: control target
= control target key end

     0   :  { %s4961_s0 = inlined_call_operand.vmem [shape: f32[2,16,1], index: 0, kind: input, shape index: {}]   ;;  %s4962_s1 = inlined_call_operand.vmem [shape: f32[2,3,16,3], index: 1, kind: input, shape index: {}]   ;;  %s4963_s2 = inlined_call_operand.hbm [shape: bf16[32,16], index: 2, kind: input, shape index: {}]   ;;  %s4964_s3 = inlined_call_operand.vmem [shape: bf16[32,16], index: 3, kind: input, shape index: {}]   ;;  %s4965_s4 = inlined_call_operand.vmem [shape: bf16[16,32], index: 4, kind: input, shape index: {}]   ;;  %s4966_s5 = inlined_call_operand.hbm [shape: f32[32,1], index: 5, kind: input, shape index: {}]   ;;  %s4967_s6 = inlined_call_operand.hbm [shape: f32[32,1], index: 6, kind: input, shape index: {}]   ;;  %s4968_s7 = inlined_call_operand.hbm [shape: f32[2,2], index: 7, kind: input, shape index: {}]   ;;  %s4969_s8 = inlined_call_operand.hbm [shape: bf16[2,4,32], index: 8, kind: input, shape index: {}]   ;;  %s4970_s9 = inlined_call_operand.hbm [shape: f32[1,32], index: 9, kind: input, shape index: {}]   ;;  %s4971_s10 = inlined_call_operand.vmem [shape: f32[32,32], index: 10, kind: input, shape index: {}]   ;;  %s4972_s11 = inlined_call_operand.vmem [shape: bf16[32,30], index: 11, kind: input, shape index: {}]   ;;  %s4973_s12 = inlined_call_operand.hbm [shape: f32[1,30], index: 12, kind: input, shape index: {}]   ;;  %s4974_s13 = inlined_call_operand.hbm [shape: bf16[30,9], index: 13, kind: input, shape index: {}]   ;;  %s4975_s14 = inlined_call_operand.vmem [shape: f32[1,9], index: 14, kind: input, shape index: {}]   ;;  %s4976_s15 = inlined_call_operand.vmem [shape: bf16[3,9,64], index: 15, kind: input, shape index: {}]   ;;  %s4977_s16 = inlined_call_operand.hbm [shape: bf16[3,4,64], index: 16, kind: input, shape index: {}]   ;;  %s4978_s17 = inlined_call_operand.vmem [shape: bf16[3,64,64], index: 17, kind: input, shape index: {}]   ;;  %s4979_s18 = inlined_call_operand.hbm [shape: f32[4,64], index: 18, kind: input, shape index: {}]   ;;  %s4980_s19 = inlined_call_operand.vmem [shape: f32[64,1], index: 19, kind: input, shape index: {}]   ;;  %s4981_s20 = inlined_call_operand.<no memory space> [shape: f32[1,1], index: 20, kind: input, shape index: {}]   ;;  %s4982_s21 = inlined_call_operand.vmem [shape: f32[2,3,16,1], index: 21, kind: output, shape index: {}]  }
   0x1   :  { %4998 = sst [smem:[#allocation28_spill]] %s4961_s0  ;;  %v26_v0 = vstv %s4981_s20 }
   0x2   :  { %4999 = sst [smem:[#allocation29_spill]] %s4962_s1  ;;  %27 = vst [vmem:[#allocation4] sm:$0x1] %v26_v0 }
   0x3   :  { %5000 = sst [smem:[#allocation30_spill]] %s4963_s2 }
   0x4   :  { %5001 = sst [smem:[#allocation31_spill]] %s4964_s3 }
   0x5   :  { %5002 = sst [smem:[#allocation32_spill]] %s4965_s4 }
   0x6   :  { %5003 = sst [smem:[#allocation33_spill]] %s4966_s5 }
   0x7   :  { %5004 = sst [smem:[#allocation34_spill]] %s4968_s7 }
   0x8   :  { %5005 = sst [smem:[#allocation35_spill]] %s4970_s9 }
   0x9   :  { %5006 = sst [smem:[#allocation36_spill]] %s4971_s10 }
   0xa   :  { %5007 = sst [smem:[#allocation37_spill]] %s4972_s11 }
   0xb   :  { %5008 = sst [smem:[#allocation38_spill]] %s4975_s14 }
   0xc   :  { %5009 = sst [smem:[#allocation39_spill]] %s4976_s15 }
   0xd   :  { %5010 = sst [smem:[#allocation40_spill]] %s4978_s17 }
   0xe   :  { %5011 = sst [smem:[#allocation41_spill]] %s4980_s19 }
   0xf   :  { %5012 = sst [smem:[#allocation42_spill]] %s4982_s21 }
  0x10   :  { %28 = vsyncpa [#allocation6], 0 }
  0x11   :  { %29 = vsyncpa [#allocation8], 0 }
  0x12   :  { %30 = vsyncpa [#allocation11], 0 }
  0x13   :  { %31 = vsyncpa [#allocation14], 0 }
  0x14   :  { %32 = vsyncpa [#allocation17], 0 }
  0x15   :  { %33 = vsyncpa [#allocation20], 0  ;;  %s4013_s26 = smov 0   ;;  %s4015_s27 = smov 0  }
  0x16   :  { %s4017_s3 = smov 0   ;;  %s4019_s28 = smov 0  }
  0x17   :  { %s4021_s29 = smov 0  }
  0x18 LB: > { %5013 = sst [smem:[#allocation27_spill]] %s3868_s29  ;;  %s3870_s20 = smov [#allocation7]   ;;  %s3868_s29 = sphi %s4021_s29, %s39_s29   ;;  %s3864_s28 = sphi %s4019_s28, %s5048_s28   ;;  %s3860_s3 = sphi %s4017_s3, %s5047_s3   ;;  %s3856_s27 = sphi %s4015_s27, %s5046_s27   ;;  %s3852_s26 = sphi %s4013_s26, %s5045_s26  }
  0x19   : > { %s568_s0 = sshll.u32 %s3870_s20, 4  ;;  %s2879_s4 = sadd.s32 4294967295, %s3868_s29   ;;  %s4045_s0 = int_to_ptr.vmem [resolvable:$true] %s568_s0 }
  0x1a   : > { %p2881_p0 = scmp.ge.s32.totalorder %s3868_s29, 1  ;;  %p537_p1 = scmp.lt.s32.totalorder %s3868_s29, 7 }
  0x1b   : > { %p4041_p2 = scmp.eq.s32.totalorder %s2879_s4, 0  ;;  %s3871_s22 = smov [#allocation10]  }
  0x1c   : > { %p4047_p3 = pnand %p2881_p0, %p537_p1  ;;  %s595_s23 = sshll.u32 %s3871_s22, 4  ;;  %s4053_s23 = int_to_ptr.vmem [resolvable:$true] %s595_s23 }
  0x1d   : > { %s5014_s30 = scalar_select %p4041_p2, 1, 0 }
  0x1e   : > { %s5015_s5 = scalar_select %p4047_p3, 1, 0 }
  0x1f   : > { %p3298_p4 = pneg %p4047_p3  ;;  %s3872_s24 = smov [#allocation13]  }
  0x20   : > { %s619_s2 = sshll.u32 %s3872_s24, 4  ;;  %s5017_s4 = sld [smem:[#allocation33_spill]]  ;;  %s4061_s2 = int_to_ptr.vmem [resolvable:$true] %s619_s2 }
  0x21   : > { %p4057_p5 = pnand %p4041_p2, %p3298_p4 }
  0x23   : > { %p4071_p7 = pneg %p4057_p5 }
  0x26   : > { %s3526_s29 = scalar_lea.hbm %s5017_s4, 512 }
  0x27   : > { %p3527_p6 = scmp.ne.s32.totalorder %s5017_s4, %s3526_s29  ;;  %p3533_p10 = scmp.lt.u32.totalorder %s3526_s29, %s5017_s4 }
  0x29   : > { %p3529_p8 = pnand %p4071_p7, %p3527_p6 }
  0x2b   : > { %p3530_p9 = pneg %p3529_p8 }
  0x2d   : > { %p3535_p11 = pnand %p3533_p10, %p3530_p9 }
  0x2f   : > { %3538 = shalt.err (!%p3535_p11)
}
  0x30   : > { %s3539_s14 = scalar_lea.vmem %s4045_s0, 512  ;;  %p3547_p1 = scmp.lt.s32.totalorder %s4045_s0, %s4045_s0 }
  0x31   : > { %p3540_p12 = scmp.ne.s32.totalorder %s4045_s0, %s3539_s14  ;;  %p3548_p4 = scmp.lt.s32.totalorder %s3539_s14, %s3539_s14 }
  0x33   : > { %p3542_p13 = pnand %p3540_p12, %p4071_p7  ;;  %p3549_p6 = por %p3548_p4, %p3547_p1 }
  0x35   : > { %p3543_p0 = pneg %p3542_p13 }
  0x37   : > { %p3550_p8 = pnand %p3549_p6, %p3543_p0 }
  0x39   : > { %3553 = shalt.err (!%p3550_p8)
}
  0x3a   : > { %s4995_s19 = smov 128   ;;  %s4996_s15 = smov 8  }
  0x3b   : > { %3304 = dma.hbm_to_vmem [thread:$0]  (!%p4057_p5), %s5017_s4, 512, %s4045_s0, [#allocation8], %s4995_s19, %s4995_s19, %s4996_s15  }
  0x3c   : > { %s5019_s7 = sld [smem:[#allocation34_spill]] }
  0x42   : > { %s3554_s14 = scalar_lea.hbm %s5019_s7, 32 }
  0x43   : > { %p3555_p9 = scmp.ne.s32.totalorder %s5019_s7, %s3554_s14  ;;  %p3561_p12 = scmp.lt.u32.totalorder %s3554_s14, %s5019_s7 }
  0x45   : > { %p3557_p10 = pnand %p3555_p9, %p4071_p7 }
  0x47   : > { %p3558_p11 = pneg %p3557_p10 }
  0x49   : > { %p3563_p13 = pnand %p3561_p12, %p3558_p11 }
  0x4b   : > { %3566 = shalt.err (!%p3563_p13)
}
  0x4c   : > { %s3567_s0 = scalar_lea.vmem %s4053_s23, 32  ;;  %p3575_p6 = scmp.lt.s32.totalorder %s4053_s23, %s4053_s23 }
  0x4d   : > { %p3568_p0 = scmp.ne.s32.totalorder %s4053_s23, %s3567_s0  ;;  %p3576_p8 = scmp.lt.s32.totalorder %s3567_s0, %s3567_s0 }
  0x4f   : > { %p3570_p1 = pnand %p3568_p0, %p4071_p7  ;;  %p3577_p9 = por %p3576_p8, %p3575_p6 }
  0x51   : > { %p3571_p4 = pneg %p3570_p1 }
  0x53   : > { %p3578_p10 = pnand %p3577_p9, %p3571_p4 }
  0x55   : > { %3581 = shalt.err (!%p3578_p10)
}
  0x56   : > { %3310 = dma.hbm_to_vmem [thread:$0]  (!%p4057_p5), %s5019_s7, 32, %s4053_s23, [#allocation11]  }
  0x57   : > { %s5020_s9 = sld [smem:[#allocation35_spill]] }
  0x5d   : > { %s3582_s29 = scalar_lea.hbm %s5020_s9, 16 }
  0x5e   : > { %p3583_p11 = scmp.ne.s32.totalorder %s5020_s9, %s3582_s29  ;;  %p3589_p0 = scmp.lt.u32.totalorder %s3582_s29, %s5020_s9 }
  0x60   : > { %p3585_p12 = pnand %p3583_p11, %p4071_p7 }
  0x62   : > { %p3586_p13 = pneg %p3585_p12 }
  0x64   : > { %p3591_p1 = pnand %p3589_p0, %p3586_p13 }
  0x66   : > { %3594 = shalt.err (!%p3591_p1)
}
  0x67   : > { %s3595_s23 = scalar_lea.vmem %s4061_s2, 16  ;;  %s3602_s0 = scalar_lea.vmem %s4061_s2, 32 }
  0x68   : > { %p3596_p4 = scmp.ne.s32.totalorder %s4061_s2, %s3595_s23  ;;  %p3603_p9 = scmp.lt.s32.totalorder %s4061_s2, %s4061_s2 }
  0x69   : > { %p3604_p10 = scmp.lt.s32.totalorder %s3602_s0, %s3595_s23 }
  0x6a   : > { %p3598_p6 = pnand %p3596_p4, %p4071_p7 }
  0x6b   : > { %p3605_p11 = por %p3604_p10, %p3603_p9 }
  0x6c   : > { %p3599_p8 = pneg %p3598_p6 }
  0x6e   : > { %p3606_p12 = pnand %p3605_p11, %p3599_p8 }
  0x70   : > { %3609 = shalt.err (!%p3606_p12)
}
  0x71   : > { %3316 = dma.hbm_to_vmem [thread:$0]  (!%p4057_p5), %s5020_s9, 16, %s4061_s2, [#allocation14]  }
  0x72   : > { %s3875_s17 = smov [#allocation16]   ;;  %s3610_s20 = scalar_lea.hbm %s4974_s13, 256 }
  0x73   : > { %s646_s21 = sshll.u32 %s3875_s17, 4  ;;  %p3611_p13 = scmp.ne.s32.totalorder %s4974_s13, %s3610_s20  ;;  %s647_s21 = int_to_ptr.vmem [resolvable:$true] %s646_s21 }
  0x74   : > { %p3617_p4 = scmp.lt.u32.totalorder %s3610_s20, %s4974_s13 }
  0x75   : > { %p3613_p0 = pnand %p3611_p13, %p4071_p7 }
  0x77   : > { %p3614_p1 = pneg %p3613_p0 }
  0x79   : > { %p3619_p6 = pnand %p3617_p4, %p3614_p1 }
  0x7b   : > { %3622 = shalt.err (!%p3619_p6)
}
  0x7c   : > { %s3623_s2 = scalar_lea.vmem %s647_s21, 256  ;;  %p3631_p11 = scmp.lt.s32.totalorder %s647_s21, %s647_s21 }
  0x7d   : > { %p3624_p8 = scmp.ne.s32.totalorder %s647_s21, %s3623_s2  ;;  %p3632_p12 = scmp.lt.s32.totalorder %s3623_s2, %s3623_s2 }
  0x7f   : > { %p3626_p9 = pnand %p3624_p8, %p4071_p7  ;;  %p3633_p2 = por %p3632_p12, %p3631_p11 }
  0x81   : > { %p3627_p10 = pneg %p3626_p9 }
  0x83   : > { %p3634_p3 = pnand %p3633_p2, %p3627_p10 }
  0x85   : > { %3637 = shalt.err (!%p3634_p3)
}
  0x86   : > { %s3876_s10 = smov 64   ;;  %s3877_s11 = smov 4  }
  0x87   : > { %3322 = dma.hbm_to_vmem [thread:$0]  (!%p4057_p5), %s4974_s13, 256, %s647_s21, [#allocation17], %s3876_s10, %s3876_s10, %s3877_s11  }
  0x88   : > { %s48_s25 = sadd.s32 1, %s3860_s3  ;;  %s51_s20 = sadd.s32 1, %s3864_s28 }
  0x89   : > { %p49_p13 = scmp.ge.s32.totalorder %s48_s25, 3  ;;  %s3878_s24 = smov [#allocation5]  }
  0x8a   : > { %s549_s14 = sshll.u32 %s3878_s24, 4  ;;  %s3879_s23 = smov [#allocation9]   ;;  %s550_s14 = int_to_ptr.vmem [resolvable:$true] %s549_s14 }
  0x8b   : > { %s5050_s25 = smov (%p49_p13, %s48_s25), 0  ;;  %s5052_s20 = smov (!%p49_p13, %s51_s20), %s3864_s28 }
  0x8c   : > { %s581_s0 = sshll.u32 %s3879_s23, 4  ;;  %s5021_s15 = sld [smem:[#allocation30_spill]]  ;;  %s582_s0 = int_to_ptr.vmem [resolvable:$true] %s581_s0 }
  0x92   : > { %s3638_s4 = scalar_lea.hbm %s5021_s15, 256 }
  0x93   : > { %p3639_p3 = scmp.ne.s32.totalorder %s5021_s15, %s3638_s4  ;;  %p3645_p4 = scmp.lt.u32.totalorder %s3638_s4, %s5021_s15 }
  0x95   : > { %p3641_p0 = pnand %p3639_p3, %p4071_p7 }
  0x97   : > { %p3642_p1 = pneg %p3641_p0 }
  0x99   : > { %p3647_p6 = pnand %p3645_p4, %p3642_p1 }
  0x9b   : > { %3650 = shalt.err (!%p3647_p6)
}
  0x9c   : > { %s3651_s29 = scalar_lea.vmem %s550_s14, 256  ;;  %p3659_p11 = scmp.lt.s32.totalorder %s550_s14, %s550_s14 }
  0x9d   : > { %p3652_p8 = scmp.ne.s32.totalorder %s550_s14, %s3651_s29  ;;  %p3660_p12 = scmp.lt.s32.totalorder %s3651_s29, %s3651_s29 }
  0x9f   : > { %p3654_p9 = pnand %p3652_p8, %p4071_p7  ;;  %p3661_p13 = por %p3660_p12, %p3659_p11 }
  0xa1   : > { %p3655_p10 = pneg %p3654_p9 }
  0xa3   : > { %p3662_p2 = pnand %p3661_p13, %p3655_p10 }
  0xa5   : > { %3665 = shalt.err (!%p3662_p2)
}
  0xa6   : > { %3301 = dma.hbm_to_vmem [thread:$0]  (!%p4057_p5), %s5021_s15, 256, %s550_s14, [#allocation6], %s3876_s10, %s3876_s10, %s3877_s11  }
  0xa7   : > { %p5022_p3 = scmp.ge.s32.totalorder %s5052_s20, 2  ;;  %s3666_s24 = scalar_lea.hbm %s4967_s6, 512 }
  0xa8   : > { %p3667_p2 = scmp.ne.s32.totalorder %s4967_s6, %s3666_s24  ;;  %p3673_p4 = scmp.lt.u32.totalorder %s3666_s24, %s4967_s6 }
  0xa9   : > { %s5054_s20 = smov (%p5022_p3, %s5052_s20), 0 }
  0xaa   : > { %p3669_p0 = pnand %p3667_p2, %p4071_p7 }
  0xac   : > { %p3670_p1 = pneg %p3669_p0 }
  0xae   : > { %p3675_p6 = pnand %p3673_p4, %p3670_p1 }
  0xb0   : > { %3678 = shalt.err (!%p3675_p6)
}
  0xb1   : > { %s3679_s10 = scalar_lea.vmem %s582_s0, 512  ;;  %p3687_p11 = scmp.lt.s32.totalorder %s582_s0, %s582_s0 }
  0xb2   : > { %p3680_p8 = scmp.ne.s32.totalorder %s582_s0, %s3679_s10  ;;  %p3688_p12 = scmp.lt.s32.totalorder %s3679_s10, %s3679_s10 }
  0xb4   : > { %p3682_p9 = pnand %p3680_p8, %p4071_p7  ;;  %p3689_p13 = por %p3688_p12, %p3687_p11 }
  0xb6   : > { %p3683_p10 = pneg %p3682_p9 }
  0xb8   : > { %p3690_p3 = pnand %p3689_p13, %p3683_p10 }
  0xba   : > { %3693 = shalt.err (!%p3690_p3)
}
  0xbb   : > { %s5023_s11 = smov 8   ;;  %s5024_s14 = smov 128  }
  0xbc   : > { %3307 = dma.hbm_to_vmem [thread:$0]  (!%p4057_p5), %s4967_s6, 512, %s582_s0, [#allocation8], %s5024_s14, %s5024_s14, %s5023_s11  }
  0xbd   : > { %s3880_s9 = smov [#allocation12]   ;;  %s3694_s23 = scalar_lea.hbm %s4969_s8, 64 }
  0xbe   : > { %s605_s4 = sshll.u32 %s3880_s9, 4  ;;  %p3695_p2 = scmp.ne.s32.totalorder %s4969_s8, %s3694_s23  ;;  %s606_s4 = int_to_ptr.vmem [resolvable:$true] %s605_s4 }
  0xbf   : > { %p3701_p4 = scmp.lt.u32.totalorder %s3694_s23, %s4969_s8 }
  0xc0   : > { %p3697_p0 = pnand %p3695_p2, %p4071_p7 }
  0xc2   : > { %p3698_p1 = pneg %p3697_p0 }
  0xc4   : > { %p3703_p6 = pnand %p3701_p4, %p3698_p1 }
  0xc6   : > { %3706 = shalt.err (!%p3703_p6)
}
  0xc7   : > { %s3707_s0 = scalar_lea.vmem %s606_s4, 64  ;;  %p3715_p11 = scmp.lt.s32.totalorder %s606_s4, %s606_s4 }
  0xc8   : > { %p3708_p8 = scmp.ne.s32.totalorder %s606_s4, %s3707_s0  ;;  %p3716_p12 = scmp.lt.s32.totalorder %s3707_s0, %s3707_s0 }
  0xca   : > { %p3710_p9 = pnand %p3708_p8, %p4071_p7  ;;  %p3717_p13 = por %p3716_p12, %p3715_p11 }
  0xcc   : > { %p3711_p10 = pneg %p3710_p9 }
  0xce   : > { %p3718_p3 = pnand %p3717_p13, %p3711_p10 }
  0xd0   : > { %3721 = shalt.err (!%p3718_p3)
}
  0xd1   : > { %s3881_s11 = smov 32   ;;  %s3882_s14 = smov 2  }
  0xd2   : > { %3313 = dma.hbm_to_vmem [thread:$0]  (!%p4057_p5), %s4969_s8, 64, %s606_s4, [#allocation11], %s3881_s11, %s3881_s11, %s3882_s14  }
  0xd3   : > { %s3883_s9 = smov [#allocation15]   ;;  %s3884_s24 = smov [#allocation18]  }
  0xd4   : > { %s636_s19 = sshll.u32 %s3883_s9, 4  ;;  %s665_s23 = sshll.u32 %s3884_s24, 4  ;;  %s637_s19 = int_to_ptr.vmem [resolvable:$true] %s636_s19  ;;  %s4234_s23 = int_to_ptr.vmem [resolvable:$true] %s665_s23 }
  0xd5   : > { %s3722_s17 = scalar_lea.hbm %s4973_s12, 16 }
  0xd6   : > { %p3723_p2 = scmp.ne.s32.totalorder %s4973_s12, %s3722_s17  ;;  %p3729_p4 = scmp.lt.u32.totalorder %s3722_s17, %s4973_s12 }
  0xd8   : > { %p3725_p0 = pnand %p3723_p2, %p4071_p7 }
  0xda   : > { %p3726_p1 = pneg %p3725_p0 }
  0xdc   : > { %p3731_p6 = pnand %p3729_p4, %p3726_p1 }
  0xde   : > { %3734 = shalt.err (!%p3731_p6)
}
  0xdf   : > { %s3735_s7 = scalar_lea.vmem %s637_s19, 16  ;;  %s3742_s9 = scalar_lea.vmem %s637_s19, 32 }
  0xe0   : > { %p3736_p8 = scmp.ne.s32.totalorder %s637_s19, %s3735_s7  ;;  %p3743_p11 = scmp.lt.s32.totalorder %s637_s19, %s637_s19 }
  0xe1   : > { %p3744_p12 = scmp.lt.s32.totalorder %s3742_s9, %s3735_s7 }
  0xe2   : > { %p3738_p9 = pnand %p3736_p8, %p4071_p7 }
  0xe3   : > { %p3745_p13 = por %p3744_p12, %p3743_p11 }
  0xe4   : > { %p3739_p10 = pneg %p3738_p9 }
  0xe6   : > { %p3746_p3 = pnand %p3745_p13, %p3739_p10 }
  0xe8   : > { %3749 = shalt.err (!%p3746_p3)
}
  0xe9   : > { %3319 = dma.hbm_to_vmem [thread:$0]  (!%p4057_p5), %s4973_s12, 16, %s637_s19, [#allocation14]  }
  0xea   : > { %s3750_s10 = scalar_lea.hbm %s4977_s16, 96 }
  0xeb   : > { %p3751_p2 = scmp.ne.s32.totalorder %s4977_s16, %s3750_s10  ;;  %p3757_p4 = scmp.lt.u32.totalorder %s3750_s10, %s4977_s16 }
  0xed   : > { %p3753_p0 = pnand %p3751_p2, %p4071_p7 }
  0xef   : > { %p3754_p1 = pneg %p3753_p0 }
  0xf1   : > { %p3759_p6 = pnand %p3757_p4, %p3754_p1 }
  0xf3   : > { %3762 = shalt.err (!%p3759_p6)
}
  0xf4   : > { %s3763_s19 = scalar_lea.vmem %s4234_s23, 96  ;;  %p3771_p11 = scmp.lt.s32.totalorder %s4234_s23, %s4234_s23 }
  0xf5   : > { %p3764_p8 = scmp.ne.s32.totalorder %s4234_s23, %s3763_s19  ;;  %p3772_p12 = scmp.lt.s32.totalorder %s3763_s19, %s3763_s19 }
  0xf7   : > { %p3766_p9 = pnand %p3764_p8, %p4071_p7  ;;  %p3773_p13 = por %p3772_p12, %p3771_p11 }
  0xf9   : > { %p3767_p10 = pneg %p3766_p9 }
  0xfb   : > { %p3774_p3 = pnand %p3773_p13, %p3767_p10 }
  0xfd   : > { %3777 = shalt.err (!%p3774_p3)
}
  0xfe   : > { %3325 = dma.hbm_to_vmem [thread:$0]  (!%p4057_p5), %s4977_s16, 96, %s4234_s23, [#allocation17], %s3881_s11, %s3881_s11, %s3882_s14  }
  0xff   : > { %s3885_s2 = smov [#allocation19]   ;;  %s3778_s0 = scalar_lea.hbm %s4979_s18, 64 }
 0x100   : > { %s682_s21 = sshll.u32 %s3885_s2, 4  ;;  %p3779_p2 = scmp.ne.s32.totalorder %s4979_s18, %s3778_s0  ;;  %s683_s21 = int_to_ptr.vmem [resolvable:$true] %s682_s21 }
 0x101   : > { %p3785_p4 = scmp.lt.u32.totalorder %s3778_s0, %s4979_s18 }
 0x102   : > { %p3781_p0 = pnand %p3779_p2, %p4071_p7 }
 0x104   : > { %p3782_p1 = pneg %p3781_p0 }
 0x106   : > { %p3787_p6 = pnand %p3785_p4, %p3782_p1 }
 0x108   : > { %3790 = shalt.err (!%p3787_p6)
}
 0x109   : > { %s3791_s11 = scalar_lea.vmem %s683_s21, 64  ;;  %p3799_p11 = scmp.lt.s32.totalorder %s683_s21, %s683_s21 }
 0x10a   : > { %p3792_p8 = scmp.ne.s32.totalorder %s683_s21, %s3791_s11  ;;  %p3800_p12 = scmp.lt.s32.totalorder %s3791_s11, %s3791_s11 }
 0x10c   : > { %p3794_p9 = pnand %p3792_p8, %p4071_p7  ;;  %p3801_p13 = por %p3800_p12, %p3799_p11 }
 0x10e   : > { %p3795_p10 = pneg %p3794_p9 }
 0x110   : > { %p3802_p3 = pnand %p3801_p13, %p3795_p10 }
 0x112   : > { %3805 = shalt.err (!%p3802_p3)
}
 0x113   : > { %3328 = dma.hbm_to_vmem [thread:$0]  (!%p4057_p5), %s4979_s18, 64, %s683_s21, [#allocation20]  }
 0x114   : > { %p5025_p2 = scmp.ne.s32.totalorder %s5015_s5, 0 }
 0x115   : > { %p5026_p0 = scmp.ne.s32.totalorder (!%p5025_p2), %s5014_s30, 0 }
 0x116   : > { %721 = sbr.rel (%p5025_p2) target bundleno = 2391 (0x957), region = 104 }
 0x11d   : > { %3827 = dma.done.wait (%p5026_p0), [#allocation6], 256  }
 0x11e   : > { %3829 = vsyncadd (%p5026_p0), [#allocation6], 4294967040 }
 0x11f   : > { %3831 = dma.done.wait (%p5026_p0), [#allocation8], 1024  }
 0x120   : > { %3833 = vsyncadd (%p5026_p0), [#allocation8], 4294966272 }
 0x121   : > { %3835 = dma.done.wait (%p5026_p0), [#allocation11], 96  }
 0x122   : > { %3837 = vsyncadd (%p5026_p0), [#allocation11], 4294967200 }
 0x123   : > { %3839 = dma.done.wait (%p5026_p0), [#allocation14], 32  }
 0x124   : > { %3841 = vsyncadd (%p5026_p0), [#allocation14], 4294967264 }
 0x125   : > { %3843 = dma.done.wait (%p5026_p0), [#allocation17], 352  }
 0x126   : > { %3845 = vsyncadd (%p5026_p0), [#allocation17], 4294966944 }
 0x127   : > { %3847 = dma.done.wait (%p5026_p0), [#allocation20], 64  }
 0x128   : > { %3849 = vsyncadd (%p5026_p0), [#allocation20], 4294967232  ;;  %p830_p5 = scmp.lt.s32.totalorder %s3856_s27, 1  ;;  %p837_p7 = scmp.lt.s32.totalorder %s3852_s26, 2 }
 0x129   : > { %s5027_s2 = sld [smem:[#allocation28_spill]]  ;;  %s5028_s4 = sld [smem:[#allocation29_spill]] }
 0x12a   : > { %s5056_s27 = smov (!%p830_p5, %s3856_s27), 1  ;;  %s5029_s14 = sld [smem:[#allocation42_spill]] }
 0x12b   : > { %s838_s5 = scalar_select %p837_p7, %s3852_s26, 2 }
 0x12c   : > { %s3020_s1 = sshll.u32 %s5056_s27, 4  ;;  %s3241_s22 = smul.u32 6, %s5056_s27 }
 0x12d   : > { %s2906_s17 = sshll.u32 %s838_s5, 1  ;;  %p2910_p1 = scmp.ne.s32.totalorder %s3852_s26, 0 }
 0x12e   : > { %s841_s10 = sadd.s32 %s3241_s22, %s2906_s17  ;;  %vm858_vm0 = vcmask (!%p2910_p1), 523264   ;;  %vm863_vm1 = vcmask (!%p2910_p1), 7168   ;;  %v3886_v3 = vmov (!%p2910_p1), 0.0  }
 0x12f   : > { %s834_s21 = scalar_lea.vmem %s5027_s2, %s3020_s1  ;;  %s2907_s0 = sshll.u32 %s841_s10, 3  ;;  %859 = vst.msk [vmem:[#allocation2] sm:$0xff] (!%p2910_p1), %vm858_vm0, %v3886_v3  ;;  %860 = vst.msk [vmem:[#allocation2 + $0x8] sm:$0xff] (!%p2910_p1), %vm858_vm0, %v3886_v3 }
 0x130   : > { %s843_s7 = scalar_lea.vmem %s5028_s4, %s2907_s0  ;;  %s4337_s23 = scalar_lea.vmem %s5029_s14, %s2907_s0  ;;  %v861_v1 = vld [vmem:[%s834_s21] sm:$0xff] (!%p2910_p1)  ;;  %v862_v2 = vld [vmem:[%s834_s21 + $0x8] sm:$0xff] (!%p2910_p1) }
 0x131   : > { %857 = sbr.rel (%p2910_p1) target bundleno = 312 (0x138), region = 148  ;;  %864 = vst.msk [vmem:[#allocation3] sm:$0xff] (!%p2910_p1), %vm863_vm1, %v861_v1  ;;  %865 = vst.msk [vmem:[#allocation3 + $0x8] sm:$0xff] (!%p2910_p1), %vm863_vm1, %v862_v2 }
 0x138 PF: > { %v868_v4 = vld [vmem:[%s843_s7] sm:$0xff]  ;;  %v869_v5 = vld [vmem:[%s843_s7 + $0x8] sm:$0xff]  ;;  %vm896_vm2 = vcmask 130048   ;;  %s3887_s27 = smov 1   ;;  %s5030_s1 = sld [smem:[#allocation31_spill]]  ;;  %vm878_vm3 = vcmask 7168  }
 0x139   : > { %v3419_v6 = vpack.i.bf16 %v869_v5, %v868_v4  ;;  %v3426_v7 = vld [vmem:[#allocation5] sm:$0xff]   ;;  %v2919_v9 = vld [vmem:[#allocation10 + $0x1] ss:$0 sm:$0xff]  ;;  %v2920_v10 = vld [vmem:[#allocation10] ss:$0 sm:$0xff]  ;;  %s3888_s22 = smov 2  }
 0x13a   : > { %3082 = vmatprep.mubr.msk.bf16.mxu0 %vm896_vm2, %v3426_v7  ;;  %1040 = vrot.lane.b32.xlu1 %v2920_v10, %s3888_s22  ;;  %v866_v12 = vld [vmem:[#allocation3] sm:$0xff]  ;;  %v867_v13 = vld [vmem:[#allocation3 + $0x8] sm:$0xff]  ;;  %vm1553_vm4 = vcmask 1041408   ;;  %vm1546_vm5 = vcmask 31744   ;;  %s3889_s2 = smov 125   ;;  %v1049_v54 = vld [vmem:[#allocation7 + $0x10] sm:$0xff] }
 0x13b   : > { %3420 = vrot.lane.b32.xlu0 %v3419_v6, %s3887_s27  ;;  %v3428_v19 = vld [vmem:[#allocation5 + $0x8] sm:$0xff]   ;;  %v1545_v21 = vld [vmem:[#allocation12 + $0x2] sm:$0x3]  ;;  %v1541_v23 = vld [vmem:[#allocation12] sm:$0x3]  ;;  %s5037_s10 = sld [smem:[#allocation37_spill]] }
 0x13c   : > { %v1555_v22 = vsel %vm1553_vm4, %v1545_v21, 0  ;;  %v1613_v44 = vsel %vm1553_vm4, %v1541_v23, 0  ;;  %v1511_v47 = vld [vmem:[#allocation9] sm:$0xff]  ;;  %v1512_v48 = vld [vmem:[#allocation9 + $0x8] sm:$0xff]  ;;  %v1050_v58 = vld [vmem:[#allocation7 + $0x18] sm:$0xff]  ;;  %s5038_s7 = sld [smem:[#allocation36_spill]] }
 0x13d   : > { %v1047_v49 = vld [vmem:[#allocation7] sm:$0xff]  ;;  %v1048_v51 = vld [vmem:[#allocation7 + $0x8] sm:$0xff]  ;;  %s5039_s24 = sld [smem:[#allocation32_spill]]  ;;  %s5041_s30 = sld [smem:[#allocation39_spill]] }
 0x13e   : > { %v3427_v8 = vld [vmem:[%s5030_s1] sm:$0xff]   ;;  %v3429_v20 = vld [vmem:[%s5030_s1 + $0x8] sm:$0xff]   ;;  %s5040_s17 = sld [smem:[#allocation40_spill]]  ;;  %s5043_s14 = sld [smem:[#allocation41_spill]] }
 0x13f   : > { %3088 = vmatprep.mubr.msk.bf16.mxu1 %vm896_vm2, %v3427_v8  ;;  %1028 = vrot.lane.b32.xlu0 %v2919_v9, %s3888_s22 }
 0x1ac   : > { %v1041_v25 = vpop.permute.xlu1 %1040 }
 0x1ad   : > { %v3421_v11 = vpop.permute.xlu0 %3420 }
 0x1ae   : > { %v3423_v14 = vunpack.i.h.bf16 %v3421_v11  ;;  %v3422_v15 = vunpack.i.l.bf16 %v3421_v11 }
 0x1b0   : > { %v879_v16 = vsel %vm878_vm3, %v866_v12, %v3422_v15  ;;  %v880_v17 = vsel %vm878_vm3, %v867_v13, %v3423_v14 }
 0x1b1   : > { %v4349_v18 = vpack.c.bf16 %v880_v17, %v879_v16  ;;  %v1029_v24 = vpop.permute.xlu0 %1028 }
 0x1b3   : > { %3080 = vmatprep.subr.bf16.mxu0 %v4349_v18  ;;  %3086 = vmatprep.subr.bf16.mxu1 %v4349_v18 }
 0x1b4   : > { %3081 = vmatpush3.bf16.msra.mxu0 %v4349_v18  ;;  %3087 = vmatpush3.bf16.msra.mxu1 %v4349_v18 }
 0x1b5   : > { %3239 = vmatprep.subr.msk.bf16.mxu0 %vm1553_vm4, %v1545_v21 }
 0x1b7   : > { %3083 = vmatmul.mubr.msk.bf16.vlgmr.msra.gmra.mrb[0].mxu0 %vm896_vm2, %v3428_v19  ;;  %3089 = vmatmul.mubr.msk.bf16.vlgmr.msra.gmra.mrb[0].mxu1 %vm896_vm2, %v3429_v20 }
 0x1b8   : > { %3093 = vmatpush3.bf16.msra.mxu0 %v1555_v22 }
 0x1b9   : > { %3240 = vmatprep.subr.msk.bf16.mxu0 %vm1553_vm4, %v1541_v23 }
 0x28a   : > { %v3084_v26 = vpop.f32.mrb[0].mxu0  ;;  %v3090_v27 = vpop.f32.mrb[0].mxu1 }
 0x28b   : > { %v937_v28 = vpop.f32.mrb[1].mxu0  ;;  %v1006_v29 = vpop.f32.mrb[1].mxu1  ;;  %v1033_v33 = vmul.f32 %v3084_v26, %v1029_v24 }
 0x28c   : > { %v1031_v30 = vmul.f32 %v1029_v24, %v937_v28  ;;  %v3085_v31 = vpop.f32.mrb[2].mxu0  ;;  %v3091_v32 = vpop.f32.mrb[2].mxu1 }
 0x28d   : > { %v1540_v34 = vpack.c.bf16 %v3085_v31, %v3084_v26  ;;  %v1543_v35 = vpack.c.bf16 %v3091_v32, %v3090_v27  ;;  %v940_v36 = vpop.f32.mrb[3].mxu0  ;;  %v1009_v37 = vpop.f32.mrb[3].mxu1  ;;  %v1034_v42 = vmul.f32 %v3085_v31, %v1029_v24  ;;  %v4373_v45 = vadd.f32 %v1041_v25, %v1033_v33 }
 0x28e   : > { %v1032_v38 = vmul.f32 %v1029_v24, %v940_v36  ;;  %v1539_v39 = vpack.c.bf16 %v940_v36, %v937_v28  ;;  %v1542_v40 = vpack.c.bf16 %v1009_v37, %v1006_v29  ;;  %v4363_v41 = vadd.f32 %v1041_v25, %v1031_v30 }
 0x28f   : > { %v4375_v46 = vadd.f32 %v1041_v25, %v1034_v42  ;;  %v3890_v33 = vmov 920167782   ;;  %v3891_v37 = vmov 2102212464  }
 0x290   : > { %v4365_v43 = vadd.f32 %v1041_v25, %v1032_v38  ;;  %3094 = vmatprep.mubr.msk.bf16.mxu0 %vm1546_vm5, %v1542_v40  ;;  %1055 = vrot.lane.b32.xlu1 %v4363_v41, %s3889_s2 }
 0x291   : > { %3095 = vmatmul.mubr.msk.bf16.vlgmr.msra.gmra.mrb[4].mxu0 %vm1546_vm5, %v1543_v35 }
 0x292   : > { %3100 = vmatprep.mubr.msk.bf16.mxu0 %vm1546_vm5, %v1539_v39  ;;  %1057 = vrot.lane.b32.xlu0 %v4365_v43, %s3889_s2  ;;  %v3892_v39 = vmov 1326507024  }
 0x293   : > { %3099 = vmatpush3.bf16.msra.mxu0 %v1613_v44 }
 0x294   : > { %1059 = vrot.lane.b32.xlu1 %v4373_v45, %s3889_s2 }
 0x296   : > { %1061 = vrot.lane.b32.xlu0 %v4375_v46, %s3889_s2  ;;  %s5042_s2 = sld [smem:[#allocation38_spill]] }
 0x298   : > { %1519 = vrot.lane.b32.xlu1 %v1511_v47, %s3888_s22 }
 0x29a   : > { %1521 = vrot.lane.b32.xlu0 %v1512_v48, %s3888_s22 }
 0x29d   : > { %3101 = vmatmul.mubr.msk.bf16.vlgmr.msra.gmra.mrb[4].mxu0 %vm1546_vm5, %v1540_v34 }
 0x302   : > { %v1056_v50 = vpop.permute.xlu1 %1055 }
 0x303   : > { %v1067_v52 = vsub.f32 %v1047_v49, %v1056_v50 }
 0x304   : > { %v1058_v53 = vpop.permute.xlu0 %1057 }
 0x305   : > { %v1071_v55 = vand.u32 2147483647, %v1067_v52  ;;  %v1068_v56 = vsub.f32 %v1048_v51, %v1058_v53 }
 0x306   : > { %v1060_v57 = vpop.permute.xlu1 %1059 }
 0x307   : > { %v4382_v59 = vmul.f32 22.5, %v1071_v55  ;;  %v1072_v60 = vand.u32 2147483647, %v1068_v56  ;;  %v1069_v61 = vsub.f32 %v1049_v54, %v1060_v57 }
 0x308   : > { %v1062_v62 = vpop.permute.xlu0 %1061 }
 0x309   : > { %v1082_v63 = vand.u32 2139095040, %v4382_v59  ;;  %v4385_v0 = vmul.f32 22.5, %v1072_v60  ;;  %v1073_v1 = vand.u32 2147483647, %v1069_v61  ;;  %v1070_v2 = vsub.f32 %v1050_v58, %v1062_v62 }
 0x30a   : > { %v1079_v19 = vand.u32 2147483647, %v4382_v59 }
 0x30b   : > { %v1083_v3 = vshrl.u32 %v1082_v63, 23  ;;  %v1185_v4 = vand.u32 2139095040, %v4385_v0  ;;  %v4388_v5 = vmul.f32 22.5, %v1073_v1  ;;  %v1074_v6 = vand.u32 2147483647, %v1070_v2 }
 0x30c   : > { %v4406_v28 = vand.u32 8388607, %v1079_v19  ;;  %v3893_v2 = vmov 683565275  }
 0x30d   : > { %v2921_v7 = vadd.s32 4294967169, %v1083_v3  ;;  %v1186_v8 = vshrl.u32 %v1185_v4, 23  ;;  %v1288_v9 = vand.u32 2139095040, %v4388_v5  ;;  %v4391_v10 = vmul.f32 22.5, %v1074_v6 }
 0x30e   : > { %v1285_v14 = vand.u32 2147483647, %v4388_v5  ;;  %v1087_v36 = vor.u32 8388608, %v4406_v28  ;;  %v3894_v4 = vmov 2475754826  }
 0x30f   : > { %v1089_v11 = vadd.s32 1, %v2921_v7  ;;  %v1289_v12 = vshrl.u32 %v1288_v9, 23  ;;  %v1391_v13 = vand.u32 2139095040, %v4391_v10  ;;  %v2925_v15 = vadd.s32 4294967169, %v1186_v8 }
 0x310   : > { %v1388_v21 = vand.u32 2147483647, %v4391_v10  ;;  %v1292_v24 = vand.u32 8388607, %v1285_v14 }
 0x311   : > { %vm1090_vm6 = vcmp.gt.s32.totalorder %v1089_v11, 0  ;;  %v2929_v16 = vadd.s32 4294967169, %v1289_v12  ;;  %v1392_v17 = vshrl.u32 %v1391_v13, 23  ;;  %v1192_v25 = vadd.s32 1, %v2925_v15 }
 0x312   : > { %v1091_v20 = vsel %vm1090_vm6, %v1089_v11, 0  ;;  %v1395_v30 = vand.u32 8388607, %v1388_v21  ;;  %v1293_v32 = vor.u32 8388608, %v1292_v24 }
 0x313   : > { %v4397_v22 = vand.u32 31, %v1091_v20  ;;  %v1295_v23 = vadd.s32 1, %v2929_v16  ;;  %v2933_v26 = vadd.s32 4294967169, %v1392_v17  ;;  %vm1193_vm8 = vcmp.gt.s32.totalorder %v1192_v25, 0 }
 0x314   : > { %v1396_v42 = vor.u32 8388608, %v1395_v30  ;;  %v4419_v44 = vshrl.u32 %v1091_v20, 5  ;;  %v4421_v47 = vsel %vm1193_vm8, %v1192_v25, 0  ;;  %v4423_v49 = vshll.u32 %v1293_v32, 8 }
 0x315   : > { %v4402_v27 = vsub.s32 32, %v4397_v22  ;;  %vm1296_vm7 = vcmp.gt.s32.totalorder %v1295_v23, 0  ;;  %v1398_v29 = vadd.s32 1, %v2933_v26  ;;  %v1105_v38 = vshll.u32 %v3891_v37, %v4397_v22 }
 0x316   : > { %v1297_v31 = vsel %vm1296_vm7, %v1295_v23, 0  ;;  %v4429_v51 = vshll.u32 %v3890_v33, %v4397_v22  ;;  %v4439_v62 = vshll.u32 %v1396_v42, 8  ;;  %v3895_v20 = vmov 2131351028  }
 0x317   : > { %v1106_v34 = vshrl.u32 %v3890_v33, %v4402_v27  ;;  %v1299_v35 = vand.u32 31, %v1297_v31  ;;  %v4417_v40 = vshrl.u32 %v3892_v39, %v4402_v27  ;;  %vm1399_vm9 = vcmp.gt.s32.totalorder %v1398_v29, 0 }
 0x318   : > { %v1298_v52 = vshrl.u32 %v1297_v31, 5  ;;  %v1400_v57 = vsel %vm1399_vm9, %v1398_v29, 0  ;;  %vm1114_vm15 = vcmp.lt.s32.totalorder %v4419_v44, 4  ;;  %vm1111_vm8 = vcmp.lt.s32.totalorder %v4419_v44, 1 }
 0x319   : > { %v1300_v48 = vsub.s32 32, %v1299_v35  ;;  %v4425_v50 = vor.u32 %v1106_v34, %v1105_v38  ;;  %v1311_v53 = vshll.u32 %v3891_v37, %v1299_v35  ;;  %v1314_v55 = vshll.u32 %v3890_v33, %v1299_v35 }
 0x31a   : > { %v1110_v58 = vor.u32 %v4417_v40, %v4429_v51  ;;  %v4437_v60 = vshrl.u32 %v1400_v57, 5  ;;  %v1402_v61 = vand.u32 31, %v1400_v57  ;;  %v1302_v3 = vshll.u32 %v3893_v2, %v1299_v35 }
 0x31b   : > { %v1312_v54 = vshrl.u32 %v3890_v33, %v1300_v48  ;;  %v1315_v56 = vshrl.u32 %v3892_v39, %v1300_v48  ;;  %v1303_v6 = vshrl.u32 %v3894_v4, %v1300_v48  ;;  %vm1320_vm10 = vcmp.lt.s32.totalorder %v1298_v52, 4 }
 0x31c   : > { %v1403_v7 = vsub.s32 32, %v1402_v61  ;;  %v1414_v8 = vshll.u32 %v3891_v37, %v1402_v61  ;;  %v1301_v9 = vshrl.u32 %v3893_v2, %v1300_v48  ;;  %v1417_v12 = vshll.u32 %v3890_v33, %v1402_v61 }
 0x31d   : > { %v1313_v63 = vor.u32 %v1312_v54, %v1311_v53  ;;  %v1316_v1 = vor.u32 %v1315_v56, %v1314_v55  ;;  %vm1423_vm11 = vcmp.lt.s32.totalorder %v4437_v60, 4  ;;  %v1304_v13 = vor.u32 %v1303_v6, %v1302_v3 }
 0x31e   : > { %v1415_v15 = vshrl.u32 %v3890_v33, %v1403_v7  ;;  %v1418_v16 = vshrl.u32 %v3892_v39, %v1403_v7  ;;  %v1305_v17 = vshll.u32 %v3894_v4, %v1299_v35  ;;  %v1306_v23 = vshrl.u32 %v3895_v20, %v1300_v48 }
 0x31f   : > { %v1330_v11 = vsel %vm1320_vm10, %v1316_v1, 1326507024  ;;  %v1326_v24 = vsel %vm1320_vm10, %v1313_v63, 920167782  ;;  %v1308_v25 = vshll.u32 %v3895_v20, %v1299_v35  ;;  %v1309_v26 = vshrl.u32 %v3891_v37, %v1300_v48 }
 0x320   : > { %vm1317_vm12 = vcmp.lt.s32.totalorder %v1298_v52, 1  ;;  %v1416_v29 = vor.u32 %v1415_v15, %v1414_v8  ;;  %v1307_v30 = vor.u32 %v1306_v23, %v1305_v17  ;;  %vm1318_vm13 = vcmp.lt.s32.totalorder %v1298_v52, 2 }
 0x321   : > { %vm1319_vm14 = vcmp.lt.s32.totalorder %v1298_v52, 3  ;;  %v1419_v31 = vor.u32 %v1418_v16, %v1417_v12  ;;  %v1310_v32 = vor.u32 %v1309_v26, %v1308_v25  ;;  %v1321_v34 = vsel %vm1317_vm12, %v1301_v9, %v1304_v13 }
 0x322   : > { %v1331_v38 = vsel %vm1319_vm14, %v1313_v63, %v1330_v11  ;;  %v1325_v42 = vsel %vm1317_vm12, %v1304_v13, %v1307_v30  ;;  %v1404_v53 = vshrl.u32 %v3893_v2, %v1403_v7  ;;  %v1405_v54 = vshll.u32 %v3893_v2, %v1402_v61 }
 0x323   : > { %v1406_v55 = vshrl.u32 %v3894_v4, %v1403_v7  ;;  %v1322_v35 = vsel %vm1320_vm10, %v1310_v32, 2102212464  ;;  %v1327_v56 = vsel %vm1319_vm14, %v1310_v32, %v1326_v24  ;;  %v1329_v48 = vsel %vm1317_vm12, %v1307_v30, %v1310_v32 }
 0x324   : > { %v1408_v57 = vshll.u32 %v3894_v4, %v1402_v61  ;;  %v1323_v1 = vsel %vm1319_vm14, %v1307_v30, %v1322_v35  ;;  %v1328_v3 = vsel %vm1318_vm13, %v1325_v42, %v1327_v56  ;;  %v1332_v6 = vsel %vm1318_vm13, %v1329_v48, %v1331_v38 }
 0x325   : > { %v1407_v8 = vor.u32 %v1406_v55, %v1405_v54  ;;  %v1324_v63 = vsel %vm1318_vm13, %v1321_v34, %v1323_v1  ;;  %v4464_v9 = vmul.u32.u64.low %v4423_v49, %v1332_v6  ;;  %v4465_v11 = vmul.u32.u64.high %v4423_v49, %v1332_v6, %v4464_v9 }
 0x326   : > { %v1409_v12 = vshrl.u32 %v3895_v20, %v1403_v7  ;;  %v1429_v13 = vsel %vm1423_vm11, %v1416_v29, 920167782  ;;  %v1433_v15 = vsel %vm1423_vm11, %v1419_v31, 1326507024  ;;  %v1411_v23 = vshll.u32 %v3895_v20, %v1402_v61 }
 0x327   : > { %v4473_v16 = vmul.u32.u64.low %v4423_v49, %v1328_v3  ;;  %v4474_v17 = vmul.u32.u64.high %v4423_v49, %v1328_v3, %v4473_v16  ;;  %v1412_v24 = vshrl.u32 %v3891_v37, %v1403_v7  ;;  %vm1420_vm0 = vcmp.lt.s32.totalorder %v4437_v60, 1 }
 0x328   : > { %v1410_v52 = vor.u32 %v1409_v12, %v1408_v57  ;;  %v1340_v25 = vmul.u32 %v4423_v49, %v1324_v63  ;;  %vm1421_vm1 = vcmp.lt.s32.totalorder %v4437_v60, 2  ;;  %vm1422_vm2 = vcmp.lt.s32.totalorder %v4437_v60, 3 }
 0x329   : > { %v1424_v26 = vsel %vm1420_vm0, %v1404_v53, %v1407_v8  ;;  %vm1342_vm6 = vc.u32 %v4465_v11, %v4473_v16  ;;  %v1413_v30 = vor.u32 %v1412_v24, %v1411_v23  ;;  %v1096_v7 = vshll.u32 %v3893_v2, %v4397_v22 }
 0x32a   : > { %v1428_v61 = vsel %vm1420_vm0, %v1407_v8, %v1410_v52  ;;  %v1343_v31 = vadd.s32 1, %v4474_v17  ;;  %v1434_v49 = vsel %vm1422_vm2, %v1416_v29, %v1433_v15  ;;  %v1097_v32 = vshrl.u32 %v3894_v4, %v4402_v27 }
 0x32b   : > { %v1099_v34 = vshll.u32 %v3894_v4, %v4397_v22  ;;  %v1425_v38 = vsel %vm1423_vm11, %v1413_v30, 2102212464  ;;  %v1430_v42 = vsel %vm1422_vm2, %v1413_v30, %v1429_v13  ;;  %v1432_v53 = vsel %vm1420_vm0, %v1410_v52, %v1413_v30 }
 0x32c   : > { %v1100_v54 = vshrl.u32 %v3895_v20, %v4402_v27  ;;  %v1344_v55 = vsel %vm1342_vm6, %v1343_v31, %v4474_v17  ;;  %v1426_v35 = vsel %vm1422_vm2, %v1410_v52, %v1425_v38  ;;  %v1431_v29 = vsel %vm1421_vm1, %v1428_v61, %v1430_v42 }
 0x32d   : > { %v1435_v56 = vsel %vm1421_vm1, %v1432_v53, %v1434_v49  ;;  %v1345_v48 = vadd.s32 %v1344_v55, %v1340_v25  ;;  %v1427_v57 = vsel %vm1421_vm1, %v1424_v26, %v1426_v35  ;;  %v4515_v6 = vand.u32 31, %v4421_v47 }
 0x32e   : > { %v4511_v1 = vmul.u32.u64.low %v4439_v62, %v1435_v56  ;;  %v4512_v3 = vmul.u32.u64.high %v4439_v62, %v1435_v56, %v4511_v1  ;;  %v4518_v8 = vmul.u32.u64.low %v4439_v62, %v1431_v29  ;;  %v4519_v63 = vmul.u32.u64.high %v4439_v62, %v1431_v29, %v4518_v8 }
 0x32f   : > { %v1098_v9 = vor.u32 %v1097_v32, %v1096_v7  ;;  %v1346_v12 = vadd.s32 536870912, %v1345_v48  ;;  %v1101_v13 = vor.u32 %v1100_v54, %v1099_v34  ;;  %v1102_v15 = vshll.u32 %v3895_v20, %v4397_v22 }
 0x330   : > { %v1103_v60 = vshrl.u32 %v3891_v37, %v4402_v27  ;;  %v1120_v17 = vsel %vm1114_vm15, %v4425_v50, 920167782  ;;  %v1124_v52 = vsel %vm1114_vm15, %v1110_v58, 1326507024  ;;  %v1443_v23 = vmul.u32 %v4439_v62, %v1427_v57 }
 0x331   : > { %v1095_v24 = vshrl.u32 %v3893_v2, %v4402_v27  ;;  %v4537_v25 = vshrl.u32 %v1346_v12, 30  ;;  %vm1445_vm7 = vc.u32 %v4512_v3, %v4518_v8  ;;  %v1446_v26 = vadd.s32 1, %v4519_v63 }
 0x332   : > { %v1104_v22 = vor.u32 %v1103_v60, %v1102_v15  ;;  %vm1112_vm9 = vcmp.lt.s32.totalorder %v4419_v44, 2  ;;  %vm1113_vm10 = vcmp.lt.s32.totalorder %v4419_v44, 3  ;;  %v1119_v40 = vsel %vm1111_vm8, %v1098_v9, %v1101_v13 }
 0x333   : > { %v1348_v51 = vshll.u32 %v4537_v25, 30  ;;  %v1125_v62 = vsel %vm1113_vm10, %v4425_v50, %v1124_v52  ;;  %v1447_v30 = vsel %vm1445_vm7, %v1446_v26, %v4519_v63  ;;  %v1127_v31 = vshll.u32 %v1087_v36, 8 }
 0x334   : > { %v1116_v27 = vsel %vm1114_vm15, %v1104_v22, 2102212464  ;;  %v1121_v58 = vsel %vm1113_vm10, %v1104_v22, %v1120_v17  ;;  %v1123_v7 = vsel %vm1111_vm8, %v1101_v13, %v1104_v22  ;;  %v4559_v49 = vsub.s32 32, %v4515_v6 }
 0x335   : > { %v1122_v61 = vsel %vm1112_vm9, %v1119_v40, %v1121_v58  ;;  %v1349_v32 = vsub.s32 %v1345_v48, %v1348_v51  ;;  %v1448_v34 = vadd.s32 %v1447_v30, %v1443_v23  ;;  %v1115_v38 = vsel %vm1111_vm8, %v1095_v24, %v1098_v9 }
 0x336   : > { %v1117_v50 = vsel %vm1113_vm10, %v1101_v13, %v1116_v27  ;;  %v1126_v42 = vsel %vm1112_vm9, %v1123_v7, %v1125_v62  ;;  %v4565_v53 = vmul.u32.u64.low %v1127_v31, %v1122_v61  ;;  %v4566_v54 = vmul.u32.u64.high %v1127_v31, %v1122_v61, %v4565_v53 }
 0x337   : > { %v1351_v55 = vsub.s32 0, %v1349_v32  ;;  %v1449_v35 = vadd.s32 536870912, %v1448_v34  ;;  %v4569_v28 = vmul.u32.u64.low %v1127_v31, %v1126_v42  ;;  %v4570_v36 = vmul.u32.u64.high %v1127_v31, %v1126_v42, %v4569_v28 }
 0x338   : > { %v1209_v29 = vshrl.u32 %v3890_v33, %v4559_v49  ;;  %v1118_v48 = vsel %vm1112_vm9, %v1115_v38, %v1117_v50  ;;  %v1137_v1 = vadd.s32 1, %v4566_v54  ;;  %v4580_v63 = vshrl.u32 %v4421_v47, 5 }
 0x339   : > { %v2930_v56 = vmin.u32 %v1351_v55, %v1349_v32  ;;  %v4576_v57 = vshrl.u32 %v1449_v35, 30  ;;  %v1208_v9 = vshll.u32 %v3891_v37, %v4515_v6  ;;  %v1212_v13 = vshrl.u32 %v3892_v39, %v4559_v49 }
 0x33a   : > { %v1134_v60 = vmul.u32 %v1127_v31, %v1118_v48  ;;  %vm1136_vm11 = vc.u32 %v4570_v36, %v4565_v53  ;;  %v1211_v47 = vshll.u32 %v3890_v33, %v4515_v6  ;;  %vm1217_vm12 = vcmp.lt.s32.totalorder %v4580_v63, 4 }
 0x33b   : > { %v1353_v12 = vclz %v2930_v56  ;;  %v1451_v15 = vshll.u32 %v4576_v57, 30  ;;  %v4589_v44 = vor.u32 %v1209_v29, %v1208_v9  ;;  %v1138_v52 = vsel %vm1136_vm11, %v1137_v1, %v4566_v54 }
 0x33c   : > { %v1139_v24 = vadd.s32 %v1138_v52, %v1134_v60  ;;  %vm1287_vm13 = vcmp.lt.s32.totalorder %v4388_v5, 0  ;;  %v1182_v39 = vand.u32 2147483647, %v4385_v0  ;;  %v1213_v22 = vor.u32 %v1212_v13, %v1211_v47 }
 0x33d   : > { %v2931_v17 = vadd.s32 4294967294, %v1353_v12  ;;  %v4594_v23 = vsub.s32 %v1448_v34, %v1451_v15  ;;  %v1223_v27 = vsel %vm1217_vm12, %v4589_v44, 920167782  ;;  %v1341_v33 = vadd.s32 %v4473_v16, %v4465_v11 }
 0x33e   : > { %v1140_v51 = vadd.s32 536870912, %v1139_v24  ;;  %v1371_v30 = vsub.s32 4, %v4537_v25  ;;  %v1200_v7 = vshrl.u32 %v3894_v4, %v4559_v49  ;;  %v1203_v31 = vshrl.u32 %v3895_v20, %v4559_v49 }
 0x33f   : > { %vm2932_vm14 = vcmp.lt.s32.totalorder %v2931_v17, 0  ;;  %v1454_v40 = vsub.s32 0, %v4594_v23  ;;  %v1189_v11 = vand.u32 8388607, %v1182_v39  ;;  %v1199_v16 = vshll.u32 %v3893_v2, %v4515_v6 }
 0x340   : > { %v1356_v26 = vsel %vm2932_vm14, 0, %v2931_v17  ;;  %v4611_v42 = vshrl.u32 %v1140_v51, 30  ;;  %v1206_v55 = vshrl.u32 %v3891_v37, %v4559_v49  ;;  %v1227_v56 = vsel %vm1217_vm12, %v1213_v22, 1326507024 }
 0x341   : > { %v1357_v58 = vsub.s32 32, %v1356_v26  ;;  %v1361_v62 = vsub.s32 4294967266, %v1356_v26  ;;  %v2934_v61 = vmin.u32 %v1454_v40, %v4594_v23  ;;  %v1358_v34 = vshll.u32 %v1349_v32, %v1356_v26 }
 0x342   : > { %v1142_v29 = vshll.u32 %v4611_v42, 30  ;;  %v1202_v32 = vshll.u32 %v3894_v4, %v4515_v6  ;;  %v1444_v48 = vadd.s32 %v4518_v8, %v4512_v3  ;;  %v1205_v9 = vshll.u32 %v3895_v20, %v4515_v6 }
 0x343   : > { %v1359_v38 = vshrl.u32 %v1341_v33, %v1357_v58  ;;  %v1362_v50 = vadd.s32 127, %v1361_v62  ;;  %v1456_v54 = vclz %v2934_v61  ;;  %vm4630_vm15 = vcmp.le.f32.partialorder %v1285_v14, 0.7853982 }
 0x344   : > { %v1143_v13 = vsub.s32 %v1139_v24, %v1142_v29  ;;  %v1201_v15 = vor.u32 %v1200_v7, %v1199_v16  ;;  %v1204_v4 = vor.u32 %v1203_v31, %v1202_v32  ;;  %v4637_v60 = vsel %vm1287_vm13, %v1371_v30, %v4537_v25 }
 0x345   : > { %v1360_v35 = vor.u32 %v1359_v38, %v1358_v34  ;;  %v1363_v28 = vshll.u32 %v1362_v50, 23  ;;  %v2935_v1 = vadd.s32 4294967294, %v1456_v54  ;;  %v1190_v3 = vor.u32 8388608, %v1189_v11 }
 0x346   : > { %v1207_v8 = vor.u32 %v1206_v55, %v1205_v9  ;;  %v1145_v52 = vsub.s32 0, %v1143_v13  ;;  %vm1214_vm1 = vcmp.lt.s32.totalorder %v4580_v63, 1  ;;  %vm1215_vm2 = vcmp.lt.s32.totalorder %v4580_v63, 2 }
 0x347   : > { %v1364_v12 = vor.u32 4788187, %v1363_v28  ;;  %vm2936_vm0 = vcmp.lt.s32.totalorder %v2935_v1, 0  ;;  %v1367_v20 = vcvt.s32.f32 %v1360_v35  ;;  %vm1216_vm6 = vcmp.lt.s32.totalorder %v4580_v63, 3 }
 0x348   : > { %v1459_v6 = vsel %vm2936_vm0, 0, %v2935_v1  ;;  %v2922_v22 = vmin.u32 %v1145_v52, %v1143_v13  ;;  %v1222_v25 = vsel %vm1214_vm1, %v1201_v15, %v1204_v4  ;;  %v1224_v33 = vsel %vm1216_vm6, %v1207_v8, %v1223_v27 }
 0x349   : > { %v1365_v17 = vand.u32 2147483647, %v1364_v12  ;;  %v1460_v14 = vsub.s32 32, %v1459_v6  ;;  %v1464_v47 = vsub.s32 4294967266, %v1459_v6  ;;  %v1461_v26 = vshll.u32 %v4594_v23, %v1459_v6 }
 0x34a   : > { %v1147_v62 = vclz %v2922_v22  ;;  %v1226_v30 = vsel %vm1214_vm1, %v1204_v4, %v1207_v8  ;;  %v1228_v61 = vsel %vm1216_vm6, %v4589_v44, %v1227_v56  ;;  %v1198_v34 = vshrl.u32 %v3893_v2, %v4559_v49 }
 0x34b   : > { %v1368_v24 = vmul.f32 %v1367_v20, %v1365_v17  ;;  %v1462_v40 = vshrl.u32 %v1444_v48, %v1460_v14  ;;  %v1465_v51 = vadd.s32 127, %v1464_v47  ;;  %v1229_v23 = vsel %vm1215_vm2, %v1226_v30, %v1228_v61 }
 0x34c   : > { %v1135_v38 = vadd.s32 %v4565_v53, %v4570_v36  ;;  %v2923_v50 = vadd.s32 4294967294, %v1147_v62  ;;  %v1230_v54 = vshll.u32 %v1190_v3, 8  ;;  %v1219_v16 = vsel %vm1217_vm12, %v1207_v8, 2102212464 }
 0x34d   : > { %v1369_v58 = vxor.u32 2147483648, %v1368_v24  ;;  %v1463_v7 = vor.u32 %v1462_v40, %v1461_v26  ;;  %v1466_v31 = vshll.u32 %v1465_v51, 23  ;;  %v1225_v2 = vsel %vm1215_vm2, %v1222_v25, %v1224_v33 }
 0x34e   : > { %vm2924_vm7 = vcmp.lt.s32.totalorder %v2923_v50, 0  ;;  %v4667_v49 = vmul.u32.u64.low %v1230_v54, %v1229_v23  ;;  %v4668_v55 = vmul.u32.u64.high %v1230_v54, %v1229_v23, %v4667_v49  ;;  %v1218_v32 = vsel %vm1214_vm1, %v1198_v34, %v1201_v15 }
 0x34f   : > { %v1370_v27 = vsel %vm1287_vm13, %v1369_v58, %v1368_v24  ;;  %v1467_v11 = vor.u32 4788187, %v1466_v31  ;;  %v1470_v36 = vcvt.s32.f32 %v1463_v7  ;;  %v1150_v35 = vsel %vm2924_vm7, 0, %v2923_v50 }
 0x350   : > { %v1373_v44 = vsel %vm4630_vm15, %v4388_v5, %v1370_v27  ;;  %v1151_v28 = vsub.s32 32, %v1150_v35  ;;  %v1155_v29 = vsub.s32 4294967266, %v1150_v35  ;;  %v1220_v56 = vsel %vm1216_vm6, %v1204_v4, %v1219_v16 }
 0x351   : > { %3450 = vcosq.f32 %v1373_v44  ;;  %v1468_v53 = vand.u32 2147483647, %v1467_v11  ;;  %v4674_v1 = vmul.u32.u64.low %v1230_v54, %v1225_v2  ;;  %v4675_v9 = vmul.u32.u64.high %v1230_v54, %v1225_v2, %v4674_v1 }
 0x352   : > { %3452 = vsinq.f32 %v1373_v44  ;;  %v1152_v12 = vshll.u32 %v1143_v13, %v1150_v35  ;;  %v1153_v3 = vshrl.u32 %v1135_v38, %v1151_v28  ;;  %v1156_v8 = vadd.s32 127, %v1155_v29 }
 0x353   : > { %v1471_v48 = vmul.f32 %v1470_v36, %v1468_v53  ;;  %v1374_v17 = vsel %vm4630_vm15, 0, %v4637_v60  ;;  %v1221_v6 = vsel %vm1215_vm2, %v1218_v32, %v1220_v56  ;;  %vm1390_vm8 = vcmp.lt.s32.totalorder %v4391_v10, 0 }
 0x354   : > { %v1154_v15 = vor.u32 %v1153_v3, %v1152_v12  ;;  %v1157_v4 = vshll.u32 %v1156_v8, 23  ;;  %vm1239_vm9 = vc.u32 %v4668_v55, %v4674_v1  ;;  %vm4688_vm10 = vcmp.le.f32.partialorder %v1388_v21, 0.7853982 }
 0x355   : > { %v1472_v20 = vxor.u32 2147483648, %v1471_v48  ;;  %v1474_v60 = vsub.s32 4, %v4576_v57  ;;  %v1240_v63 = vadd.s32 1, %v4675_v9  ;;  %v1378_v52 = vand.u32 3, %v1374_v17 }
 0x356   : > { %v1158_v47 = vor.u32 4788187, %v1157_v4  ;;  %v1237_v24 = vmul.u32 %v1230_v54, %v1221_v6  ;;  %v1161_v26 = vcvt.s32.f32 %v1154_v15  ;;  %vm1377_vm14 = vweird.f32 %v4388_v5 }
 0x357   : > { %v1473_v37 = vsel %vm1390_vm8, %v1472_v20, %v1471_v48  ;;  %v1241_v21 = vsel %vm1239_vm9, %v1240_v63, %v4675_v9  ;;  %v1475_v58 = vsel %vm1390_vm8, %v1474_v60, %v4576_v57  ;;  %vm1383_vm11 = vcmp.eq.s32.totalorder %v1378_v52, 2 }
 0x358   : > { %v1476_v14 = vsel %vm4688_vm10, %v4391_v10, %v1473_v37  ;;  %v1159_v25 = vand.u32 2147483647, %v1158_v47  ;;  %v1242_v40 = vadd.s32 %v1241_v21, %v1237_v24  ;;  %vm1379_vm12 = vcmp.lt.s32.totalorder %v1378_v52, 2 }
 0x359   : > { %3454 = vcosq.f32 %v1476_v14  ;;  %vm1380_vm13 = vcmp.eq.s32.totalorder %v1378_v52, 0  ;;  %v1477_v34 = vsel %vm4688_vm10, 0, %v1475_v58  ;;  %vm1081_vm15 = vcmp.lt.s32.totalorder %v4382_v59, 0 }
 0x35a   : > { %3456 = vsinq.f32 %v1476_v14  ;;  %v1162_v30 = vmul.f32 %v1161_v26, %v1159_v25  ;;  %v1243_v61 = vadd.s32 536870912, %v1242_v40  ;;  %v1165_v57 = vsub.s32 4, %v4611_v42 }
 0x35b   : > { %v3451_v22 = vpop.eup %3450  ;;  %vm4712_vm0 = vcmp.le.f32.partialorder %v1079_v19, 0.7853982  ;;  %v1481_v16 = vand.u32 3, %v1477_v34  ;;  %vm1480_vm7 = vweird.f32 %v4391_v10  ;;  %v1238_v60 = vadd.s32 %v4674_v1, %v4668_v55  ;;  %v1513_v1 = vld [vmem:[#allocation9 + $0x10] sm:$0xff] }
 0x35c   : > { %v3453_v51 = vpop.eup %3452  ;;  %v1384_v33 = vxor.u32 2147483648, %v3451_v22  ;;  %v1163_v23 = vxor.u32 2147483648, %v1162_v30  ;;  %v4705_v27 = vshrl.u32 %v1243_v61, 30  ;;  %v1166_v53 = vsel %vm1081_vm15, %v1165_v57, %v4611_v42 }
 0x35d   : > { %v1381_v62 = vxor.u32 2147483648, %v3453_v51  ;;  %vm1486_vm1 = vcmp.eq.s32.totalorder %v1481_v16, 2  ;;  %vm1483_vm2 = vcmp.eq.s32.totalorder %v1481_v16, 0  ;;  %v1168_v32 = vsel %vm4712_vm0, 0, %v1166_v53 }
 0x35e   : > { %v1385_v7 = vsel %vm1383_vm11, %v1384_v33, %v3453_v51  ;;  %v1164_v44 = vsel %vm1081_vm15, %v1163_v23, %v1162_v30  ;;  %v1245_v11 = vshll.u32 %v4705_v27, 30  ;;  %vm1482_vm6 = vcmp.lt.s32.totalorder %v1481_v16, 2 }
 0x35f   : > { %v1382_v31 = vsel %vm1380_vm13, %v3451_v22, %v1381_v62  ;;  %v1167_v5 = vsel %vm4712_vm0, %v4382_v59, %v1164_v44  ;;  %v1172_v42 = vand.u32 3, %v1168_v32  ;;  %vm1184_vm13 = vcmp.lt.s32.totalorder %v4385_v0, 0 }
 0x360   : > { %v1386_v38 = vsel %vm1379_vm12, %v1382_v31, %v1385_v7  ;;  %3458 = vcosq.f32 %v1167_v5  ;;  %v1246_v2 = vsub.s32 %v1242_v40, %v1245_v11  ;;  %vm1171_vm12 = vweird.f32 %v4382_v59 }
 0x361   : > { %v1387_v50 = vsel %vm1377_vm14, nan, %v1386_v38  ;;  %3460 = vsinq.f32 %v1167_v5  ;;  %vm1177_vm9 = vcmp.eq.s32.totalorder %v1172_v42, 2  ;;  %vm1173_vm10 = vcmp.lt.s32.totalorder %v1172_v42, 2 }
 0x362   : > { %1499 = vrot.lane.b32.xlu1 %v1387_v50, %s3888_s22  ;;  %v1248_v35 = vsub.s32 0, %v1246_v2  ;;  %vm1174_vm11 = vcmp.eq.s32.totalorder %v1172_v42, 0  ;;  %vm1183_vm14 = vcmp.le.f32.partialorder %v1182_v39, 0.7853982  ;;  %v1268_v7 = vsub.s32 4, %v4705_v27 }
 0x363   : > { %v3455_v49 = vpop.eup %3454  ;;  %v3896_v57 = vmov 2  }
 0x364   : > { %v3457_v19 = vpop.eup %3456  ;;  %v1487_v36 = vxor.u32 2147483648, %v3455_v49  ;;  %v2926_v56 = vmin.u32 %v1248_v35, %v1246_v2  ;;  %v1269_v34 = vsel %vm1184_vm13, %v1268_v7, %v4705_v27  ;;  %3424 = vset.pattern.permute.xlu1 %v3896_v57  ;;  %3425 = vset.pattern.permute.xlu0 %v3896_v57  ;;  %v1514_v27 = vld [vmem:[#allocation9 + $0x18] sm:$0xff] }
 0x365   : > { %v1484_v28 = vxor.u32 2147483648, %v3457_v19  ;;  %v1271_v23 = vsel %vm1183_vm14, 0, %v1269_v34 }
 0x366   : > { %v1488_v29 = vsel %vm1486_vm1, %v1487_v36, %v3457_v19  ;;  %v1250_v12 = vclz %v2926_v56  ;;  %v1275_v38 = vand.u32 3, %v1271_v23 }
 0x367   : > { %v1485_v48 = vsel %vm1483_vm2, %v3455_v49, %v1484_v28  ;;  %vm1274_vm2 = vweird.f32 %v4385_v0  ;;  %v1520_v49 = vpop.permute.xlu1 %1519 }
 0x368   : > { %v1489_v9 = vsel %vm1482_vm6, %v1485_v48, %v1488_v29  ;;  %v2927_v8 = vadd.s32 4294967294, %v1250_v12  ;;  %vm1280_vm15 = vcmp.eq.s32.totalorder %v1275_v38, 2  ;;  %vm1277_vm0 = vcmp.eq.s32.totalorder %v1275_v38, 0  ;;  %v1522_v48 = vpop.permute.xlu0 %1521 }
 0x369   : > { %v1490_v3 = vsel %vm1480_vm7, nan, %v1489_v9  ;;  %vm1276_vm1 = vcmp.lt.s32.totalorder %v1275_v38, 2  ;;  %vm1756_vm6 = vcmask 261120   ;;  %vm3898_vm7 = vmmov 0  }
 0x36a   : > { %1501 = vrot.lane.b32.xlu0 %v1490_v3, %s3888_s22  ;;  %v3459_v20 = vpop.eup %3458  ;;  %vm2928_vm8 = vcmp.lt.s32.totalorder %v2927_v8, 0 }
 0x36b   : > { %v3461_v15 = vpop.eup %3460  ;;  %v1178_v4 = vxor.u32 2147483648, %v3459_v20  ;;  %v1253_v13 = vsel %vm2928_vm8, 0, %v2927_v8  ;;  %vm1916_vm8 = vcmask 1046528  }
 0x36c   : > { %v1175_v10 = vxor.u32 2147483648, %v3461_v15  ;;  %v1254_v63 = vsub.s32 32, %v1253_v13  ;;  %v1258_v52 = vsub.s32 4294967266, %v1253_v13  ;;  %v1255_v21 = vshll.u32 %v1246_v2, %v1253_v13  ;;  %v3431_v13 = vld [vmem:[%s5037_s10 + $0x8] sm:$0xff]  }
 0x36d   : > { %v1179_v47 = vsel %vm1177_vm9, %v1178_v4, %v3461_v15  ;;  %vm1912_vm9 = vcmask 244736  }
 0x36e   : > { %v1176_v24 = vsel %vm1174_vm11, %v3459_v20, %v1175_v10  ;;  %v1256_v22 = vshrl.u32 %v1238_v60, %v1254_v63  ;;  %v1259_v25 = vadd.s32 127, %v1258_v52  ;;  %vm2037_vm11 = vcmask 1044480  }
 0x36f   : > { %v1180_v26 = vsel %vm1173_vm10, %v1176_v24, %v1179_v47  ;;  %v1699_v47 = vld [vmem:[%s5038_s7] sm:$0xff]  ;;  %vm2036_vm10 = vcmask 1043456  }
 0x370   : > { %v4726_v17 = vpop.f32.mrb[4].mxu0  ;;  %v1181_v40 = vsel %vm1171_vm12, nan, %v1180_v26  ;;  %v1257_v51 = vor.u32 %v1256_v22, %v1255_v21  ;;  %v1260_v33 = vshll.u32 %v1259_v25, 23  ;;  %v1701_v21 = vld [vmem:[%s5038_s7 + $0x10] sm:$0xff]  ;;  %vm2116_vm12 = vcmask 523264  }
 0x371   : > { %v4728_v6 = vpop.f32.mrb[5].mxu0  ;;  %1495 = vrot.lane.b32.xlu1 %v1181_v40, %s3888_s22 }
 0x372   : > { %v4730_v37 = vpop.f32.mrb[6].mxu0  ;;  %v1261_v55 = vor.u32 4788187, %v1260_v33  ;;  %v1264_v62 = vcvt.s32.f32 %v1257_v51  ;;  %v1700_v33 = vld [vmem:[%s5038_s7 + $0x8] sm:$0xff] }
 0x373   : > { %v4734_v14 = vpop.f32.mrb[7].mxu0 }
 0x374   : > { %v1262_v58 = vand.u32 2147483647, %v1261_v55 }
 0x375   : > { %1523 = vrot.lane.b32.xlu1 %v1513_v1, %s3888_s22 }
 0x376   : > { %v1265_v30 = vmul.f32 %v1264_v62, %v1262_v58 }
 0x378   : > { %v1266_v61 = vxor.u32 2147483648, %v1265_v30 }
 0x37a   : > { %v1267_v59 = vsel %vm1184_vm13, %v1266_v61, %v1265_v30  ;;  %vm2032_vm13 = vcmask 72704  }
 0x37b   : > { %v1270_v31 = vsel %vm1183_vm14, %v4385_v0, %v1267_v59 }
 0x37c   : > { %3462 = vcosq.f32 %v1270_v31 }
 0x37d   : > { %3464 = vsinq.f32 %v1270_v31 }
 0x386   : > { %v3463_v50 = vpop.eup %3462 }
 0x387   : > { %v3465_v54 = vpop.eup %3464  ;;  %v1281_v44 = vxor.u32 2147483648, %v3463_v50 }
 0x388   : > { %v1278_v11 = vxor.u32 2147483648, %v3465_v54 }
 0x389   : > { %v1282_v39 = vsel %vm1280_vm15, %v1281_v44, %v3465_v54 }
 0x38a   : > { %v1279_v16 = vsel %vm1277_vm0, %v3463_v50, %v1278_v11 }
 0x38b   : > { %v1283_v5 = vsel %vm1276_vm1, %v1279_v16, %v1282_v39 }
 0x38c   : > { %v1284_v2 = vsel %vm1274_vm2, nan, %v1283_v5 }
 0x38d   : > { %1497 = vrot.lane.b32.xlu0 %v1284_v2, %s3888_s22  ;;  %v3897_v2 = vmov 0.0  }
 0x38e   : > { %3120 = vmatprep.subr.bf16.mxu0 %v3897_v2  ;;  %3124 = vmatprep.mubr.msk.bf16.mxu0 %vm3898_vm7, %v3897_v2 }
 0x391   : > { %1525 = vrot.lane.b32.xlu0 %v1514_v27, %s3888_s22  ;;  %v3433_v27 = vld [vmem:[#allocation16] sm:$0xff]  }
 0x392   : > { %3121 = vmatpush3.bf16.msra.mxu0 %v3433_v27  ;;  %v2957_v27 = vld [vmem:[%s5042_s2] ss:$0 sm:$0xff] }
 0x393   : > { %3122 = vmatprep.subr.bf16.mxu0 %v3897_v2 }
 0x3d4   : > { %v1500_v53 = vpop.permute.xlu1 %1499 }
 0x3d5   : > { %v1509_v35 = vmul.f32 %v1500_v53, %v4373_v45  ;;  %v3430_v45 = vld [vmem:[%s5037_s10] sm:$0xff]  }
 0x3d6   : > { %3104 = vmatprep.subr.bf16.mxu1 %v3430_v45 }
 0x3d7   : > { %3105 = vmatpush3.bf16.msra.mxu1 %v3430_v45 }
 0x3d8   : > { %3106 = vmatprep.subr.bf16.mxu1 %v3431_v13 }
 0x3db   : > { %3107 = vmatpush3.bf16.msra.mxu1 %v3431_v13 }
 0x3dc   : > { %v1502_v9 = vpop.permute.xlu0 %1501  ;;  %3112 = vmatprep.subr.bf16.mxu1 %v3897_v2 }
 0x3dd   : > { %v1510_v42 = vmul.f32 %v1502_v9, %v4375_v46  ;;  %v2941_v46 = vld [vmem:[#allocation13] ss:$0 sm:$0xff] }
 0x3e3   : > { %v1496_v19 = vpop.permute.xlu1 %1495 }
 0x3e4   : > { %v1507_v36 = vmul.f32 %v1496_v19, %v4363_v41 }
 0x3e6   : > { %v1531_v28 = vmul.f32 %v1520_v49, %v1507_v36  ;;  %v2946_v49 = vld [vmem:[#allocation15] ss:$0 sm:$0xff] }
 0x3e7   : > { %v1524_v29 = vpop.permute.xlu1 %1523 }
 0x3e8   : > { %v1535_v32 = vmax.f32 %v1531_v28, 0.0  ;;  %v1533_v56 = vmul.f32 %v1524_v29, %v1509_v35 }
 0x3ea   : > { %1667 = vperm.xlu1 %3424, %v1535_v32   ;;  %v1537_v0 = vmax.f32 %v1533_v56, 0.0 }
 0x3ee   : > { %1677 = vperm.xlu1 %3424, %v1537_v0  }
 0x3ff   : > { %v1498_v12 = vpop.permute.xlu0 %1497 }
 0x400   : > { %v1508_v3 = vmul.f32 %v1498_v12, %v4365_v43 }
 0x402   : > { %v1532_v8 = vmul.f32 %v1522_v48, %v1508_v3 }
 0x403   : > { %v1526_v20 = vpop.permute.xlu0 %1525 }
 0x404   : > { %v1536_v15 = vmax.f32 %v1532_v8, 0.0  ;;  %v1534_v41 = vmul.f32 %v1526_v20, %v1510_v42 }
 0x406   : > { %v1538_v4 = vmax.f32 %v1534_v41, 0.0  ;;  %1672 = vperm.xlu0 %3425, %v1536_v15  }
 0x408   : > { %1682 = vperm.xlu1 %3424, %v1538_v4  }
 0x469   : > { %v1668_v43 = vpop.permute.xlu1 %1667 }
 0x46a   : > { %v1691_v60 = vmul.f32 %v2941_v46, %v1668_v43 }
 0x46c   : > { %v1695_v52 = vadd.f32 %v1691_v60, %v4728_v6 }
 0x46d   : > { %v1678_v10 = vpop.permute.xlu1 %1677 }
 0x46e   : > { %v1693_v63 = vmul.f32 %v2941_v46, %v1678_v10  ;;  %v1703_v22 = vadd.f32 %v1699_v47, %v1695_v52  ;;  %v1979_v52 = vld [vmem:[#allocation18] sm:$0x3]  ;;  %v3432_v47 = vld [vmem:[%s5039_s24] sm:$0xff]  }
 0x470   : > { %v1697_v24 = vadd.f32 %v4726_v17, %v1693_v63  ;;  %v2942_v26 = vmul.f32 -1.442695, %v1703_v22  ;;  %v1702_v17 = vld [vmem:[%s5038_s7 + $0x18] sm:$0xff] }
 0x472   : > { %v1705_v25 = vadd.f32 %v1701_v21, %v1697_v24  ;;  %3466 = vpow2.f32 %v2942_v26  ;;  %v1984_v24 = vsel %vm1553_vm4, %v1979_v52, 0  ;;  %v3434_v21 = vld [vmem:[#allocation16 + $0x8] sm:$0x7f]  }
 0x473   : > { %v1918_v22 = vsel %vm1916_vm8, %v3434_v21, 0 }
 0x474   : > { %v2944_v6 = vmul.f32 -1.442695, %v1705_v25  ;;  %3123 = vmatpush3.bf16.msra.mxu0 %v1918_v22 }
 0x475   : > { %3134 = vmatprep.subr.bf16.mxu0 %v3897_v2 }
 0x476   : > { %3468 = vpow2.f32 %v2944_v6 }
 0x47c   : > { %v3467_v31 = vpop.eup %3466 }
 0x47d   : > { %v1719_v23 = vadd.f32 1.0, %v3467_v31 }
 0x480   : > { %v3469_v34 = vpop.eup %3468 }
 0x485   : > { %v1673_v40 = vpop.permute.xlu0 %1672 }
 0x486   : > { %v1692_v51 = vmul.f32 %v2941_v46, %v1673_v40 }
 0x487   : > { %v1683_v55 = vpop.permute.xlu1 %1682 }
 0x488   : > { %v1696_v1 = vadd.f32 %v1692_v51, %v4734_v14  ;;  %v1694_v58 = vmul.f32 %v2941_v46, %v1683_v55  ;;  %v1721_v14 = vadd.f32 1.0, %v3469_v34  ;;  %v3437_v34 = vld [vmem:[%s5040_s17 + $0x10] sm:$0xff]  }
 0x48a   : > { %v1704_v62 = vadd.f32 %v1700_v33, %v1696_v1  ;;  %v1698_v30 = vadd.f32 %v4730_v37, %v1694_v58 }
 0x48c   : > { %v2943_v61 = vmul.f32 -1.442695, %v1704_v62  ;;  %v1706_v59 = vadd.f32 %v1702_v17, %v1698_v30  ;;  %v3435_v17 = vld [vmem:[%s5040_s17] sm:$0xff]   ;;  %v3899_v30 = vmov 65535  }
 0x48d   : > { %v3438_v62 = vld [vmem:[%s5041_s30] sm:$0x1f]  }
 0x48e   : > { %3470 = vpow2.f32 %v2943_v61  ;;  %v2945_v7 = vmul.f32 -1.442695, %v1706_v59  ;;  %v2038_v61 = vsel %vm2036_vm10, 4294967295, %v3899_v30  ;;  %v3436_v59 = vld [vmem:[%s5040_s17 + $0x8] sm:$0xff]  }
 0x490   : > { %3472 = vpow2.f32 %v2945_v7  ;;  %v4813_v7 = vsel %vm2037_vm11, %v2038_v61, 0  ;;  %v2579_v61 = vld [vmem:[%s5043_s14 + $0x30] sm:$0xff] }
 0x491   : > { %3474 = vrcp.f32 %v1719_v23  ;;  %v2041_v31 = vand.u32 %v3438_v62, %v4813_v7  ;;  %v3439_v23 = vld [vmem:[%s5040_s17 + $0x18] sm:$0xff]   ;;  %v2578_v62 = vld [vmem:[%s5043_s14 + $0x28] sm:$0xff] }
 0x498   : > { %v3471_v38 = vpop.eup %3470 }
 0x499   : > { %v1720_v57 = vadd.f32 1.0, %v3471_v38  ;;  %v4825_v38 = vld [vmem:[#allocation2] sm:$0xff] }
 0x49a   : > { %v3473_v50 = vpop.eup %3472 }
 0x49b   : > { %3476 = vrcp.f32 %v1720_v57  ;;  %v1722_v54 = vadd.f32 1.0, %v3473_v50  ;;  %v3475_v44 = vpop.eup %3474  ;;  %v3440_v50 = vld [vmem:[%s5040_s17 + $0x20] sm:$0xff]  }
 0x49c   : > { %3478 = vrcp.f32 %v1721_v14  ;;  %v4827_v14 = vld [vmem:[#allocation2 + $0x8] sm:$0xff] }
 0x49d   : > { %3480 = vrcp.f32 %v1722_v54  ;;  %v1975_v57 = vpack.c.bf16 %v4827_v14, %v4825_v38  ;;  %v3441_v54 = vld [vmem:[%s5040_s17 + $0x28] sm:$0xff]  }
 0x4a5   : > { %v3477_v37 = vpop.eup %3476 }
 0x4a6   : > { %v3479_v11 = vpop.eup %3478  ;;  %v1731_v39 = vpack.c.bf16 %v3477_v37, %v3475_v44  ;;  %v3442_v44 = vld [vmem:[%s5040_s17 + $0x30] sm:$0xff]   ;;  %v3444_v37 = vld [vmem:[%s5040_s17 + $0x38] sm:$0xff]  }
 0x4a7   : > { %v3481_v16 = vpop.eup %3480 }
 0x4a8   : > { %3108 = vmatprep.mubr.msk.bf16.mxu1 %vm1756_vm6, %v1731_v39  ;;  %v1732_v5 = vpack.c.bf16 %v3481_v16, %v3479_v11  ;;  %v3445_v11 = vld [vmem:[%s5040_s17 + $0x40] sm:$0xff]   ;;  %v3446_v39 = vld [vmem:[%s5040_s17 + $0x48] sm:$0xff]   ;;  %v3447_v16 = vld [vmem:[%s5040_s17 + $0x50] sm:$0xff]  }
 0x4aa   : > { %3109 = vmatmul.mubr.msk.bf16.vlgmr.msra.gmra.mrb[4].mxu1 %vm1756_vm6, %v1732_v5  ;;  %v3449_v5 = vld [vmem:[%s5040_s17 + $0x58] sm:$0xff]  }
 0x4ab   : > { %3116 = vmatprep.mubr.msk.bf16.mxu1 %vm3898_vm7, %v3897_v2 }
 0x57d   : > { %v3110_v53 = vpop.f32.mrb[4].mxu1 }
 0x57e   : > { %v1806_v19 = vadd.f32 %v3110_v53, %v2946_v49  ;;  %v1797_v36 = vpop.f32.mrb[5].mxu1 }
 0x57f   : > { %v1798_v35 = vadd.f32 %v2946_v49, %v1797_v36  ;;  %v3111_v28 = vpop.f32.mrb[6].mxu1 }
 0x580   : > { %v2953_v29 = vmul.f32 -1.442695, %v1806_v19  ;;  %v1809_v32 = vadd.f32 %v3111_v28, %v2946_v49  ;;  %v1800_v56 = vpop.f32.mrb[7].mxu1 }
 0x581   : > { %v2951_v0 = vmul.f32 -1.442695, %v1798_v35  ;;  %v1801_v48 = vadd.f32 %v2946_v49, %v1800_v56 }
 0x582   : > { %3482 = vpow2.f32 %v2953_v29  ;;  %v2954_v9 = vmul.f32 -1.442695, %v1809_v32 }
 0x583   : > { %3484 = vpow2.f32 %v2951_v0  ;;  %v2952_v12 = vmul.f32 -1.442695, %v1801_v48 }
 0x584   : > { %3486 = vpow2.f32 %v2954_v9 }
 0x585   : > { %3488 = vpow2.f32 %v2952_v12  ;;  %v2186_v12 = vld [vmem:[#allocation18 + $0x2] sm:$0x3] }
 0x58c   : > { %v3483_v3 = vpop.eup %3482 }
 0x58d   : > { %v3485_v42 = vpop.eup %3484  ;;  %v1826_v8 = vadd.f32 1.0, %v3483_v3 }
 0x58e   : > { %v3487_v20 = vpop.eup %3486  ;;  %v1824_v15 = vadd.f32 1.0, %v3485_v42 }
 0x58f   : > { %v3489_v41 = vpop.eup %3488  ;;  %3490 = vrcp.f32 %v1826_v8  ;;  %v1827_v4 = vadd.f32 1.0, %v3487_v20  ;;  %v2188_v20 = vsel %vm1553_vm4, %v2186_v12, 0 }
 0x590   : > { %3492 = vrcp.f32 %v1824_v15  ;;  %v1825_v45 = vadd.f32 1.0, %v3489_v41  ;;  %v3443_v15 = vld [vmem:[%s5041_s30 + $0x8] sm:$0x1f]  }
 0x591   : > { %3494 = vrcp.f32 %v1827_v4  ;;  %v2237_v41 = vand.u32 %v3443_v15, %v4813_v7  ;;  %v2379_v4 = vld [vmem:[#allocation18 + $0x4] sm:$0x3] }
 0x592   : > { %3496 = vrcp.f32 %v1825_v45  ;;  %v2381_v45 = vsel %vm1553_vm4, %v2379_v4, 0 }
 0x599   : > { %v3491_v13 = vpop.eup %3490 }
 0x59a   : > { %v3493_v43 = vpop.eup %3492 }
 0x59b   : > { %v3495_v46 = vpop.eup %3494 }
 0x59c   : > { %v3497_v10 = vpop.eup %3496  ;;  %v1839_v60 = vpack.c.bf16 %v3495_v46, %v3491_v13  ;;  %v3448_v13 = vld [vmem:[%s5041_s30 + $0x10] sm:$0x1f]  }
 0x59d   : > { %v1838_v63 = vpack.c.bf16 %v3497_v10, %v3493_v43  ;;  %v2430_v43 = vand.u32 %v3448_v13, %v4813_v7 }
 0x59f   : > { %3113 = vmatpush3.bf16.msra.mxu1 %v1838_v63 }
 0x5a0   : > { %3114 = vmatprep.subr.bf16.mxu1 %v3897_v2 }
 0x5a3   : > { %3115 = vmatpush3.bf16.msra.mxu1 %v1839_v60 }
 0x5a4   : > { %3128 = vmatprep.subr.bf16.mxu1 %v3897_v2 }
 0x5a6   : > { %3117 = vmatmul.mubr.msk.bf16.vlgmr.msra.gmra.mrb[8].mxu1 %vm1756_vm6, %v3432_v47 }
 0x5a7   : > { %3129 = vmatpush3.bf16.msra.mxu1 %v1984_v24  ;;  %3130 = vmatprep.mubr.msk.bf16.mxu1 %vm3898_vm7, %v3897_v2 }
 0x5a8   : > { %3140 = vmatprep.subr.bf16.mxu1 %v3897_v2 }
 0x5ae   : > { %3131 = vmatmul.mubr.msk.bf16.vlgmr.msra.gmra.mrb[12].mxu1 %vm1546_vm5, %v4349_v18 }
 0x5af   : > { %3148 = vmatprep.mubr.msk.bf16.mxu1 %vm3898_vm7, %v3897_v2  ;;  %3141 = vmatpush3.bf16.msra.mxu1 %v3435_v17  ;;  %v2577_v17 = vld [vmem:[%s5043_s14 + $0x20] sm:$0xff] }
 0x5b0   : > { %3142 = vmatprep.subr.bf16.mxu1 %v3897_v2  ;;  %v3227_v30 = vpack.c.bf16 %v2578_v62, %v2577_v17 }
 0x5b3   : > { %3143 = vmatpush3.bf16.msra.mxu1 %v3436_v59  ;;  %v2580_v59 = vld [vmem:[%s5043_s14 + $0x38] sm:$0xff] }
 0x5b4   : > { %3144 = vmatprep.subr.bf16.mxu1 %v3897_v2  ;;  %v3231_v7 = vpack.c.bf16 %v2580_v59, %v2579_v61 }
 0x5b7   : > { %3145 = vmatpush3.bf16.msra.mxu1 %v3437_v34 }
 0x5b8   : > { %3146 = vmatprep.subr.bf16.mxu1 %v3897_v2 }
 0x5bb   : > { %3147 = vmatpush3.bf16.msra.mxu1 %v3439_v23 }
 0x5bc   : > { %3164 = vmatprep.subr.bf16.mxu1 %v3897_v2 }
 0x5be   : > { %3149 = vmatmul.mubr.msk.bf16.vlgmr.msra.gmra.mrb[16].mxu1 %vm2116_vm12, %v1975_v57 }
 0x5bf   : > { %3165 = vmatpush3.bf16.msra.mxu1 %v3440_v50  ;;  %3172 = vmatprep.mubr.msk.bf16.mxu1 %vm3898_vm7, %v3897_v2 }
 0x5c0   : > { %3166 = vmatprep.subr.bf16.mxu1 %v3897_v2 }
 0x5c3   : > { %3167 = vmatpush3.bf16.msra.mxu1 %v3441_v54 }
 0x5c4   : > { %3168 = vmatprep.subr.bf16.mxu1 %v3897_v2 }
 0x5c7   : > { %3169 = vmatpush3.bf16.msra.mxu1 %v3442_v44 }
 0x5c8   : > { %3170 = vmatprep.subr.bf16.mxu1 %v3897_v2 }
 0x5cb   : > { %3171 = vmatpush3.bf16.msra.mxu1 %v3444_v37 }
 0x5cc   : > { %3188 = vmatprep.subr.bf16.mxu1 %v3897_v2 }
 0x5ce   : > { %3173 = vmatmul.mubr.msk.bf16.vlgmr.msra.gmra.mrb[20].mxu1 %vm2116_vm12, %v1975_v57 }
 0x5cf   : > { %3189 = vmatpush3.bf16.msra.mxu1 %v3445_v11  ;;  %3196 = vmatprep.mubr.msk.bf16.mxu1 %vm3898_vm7, %v3897_v2 }
 0x5d0   : > { %3190 = vmatprep.subr.bf16.mxu1 %v3897_v2 }
 0x5d3   : > { %3191 = vmatpush3.bf16.msra.mxu1 %v3446_v39 }
 0x5d4   : > { %3192 = vmatprep.subr.bf16.mxu1 %v3897_v2 }
 0x5d7   : > { %3193 = vmatpush3.bf16.msra.mxu1 %v3447_v16 }
 0x5d8   : > { %3194 = vmatprep.subr.bf16.mxu1 %v3897_v2 }
 0x5db   : > { %3195 = vmatpush3.bf16.msra.mxu1 %v3449_v5 }
 0x5de   : > { %3197 = vmatmul.mubr.msk.bf16.vlgmr.msra.gmra.mrb[24].mxu1 %vm2116_vm12, %v1975_v57  ;;  %v2971_v57 = vld [vmem:[#allocation19] ss:$0 sm:$0xff] }
 0x679   : > { %v1882_v25 = vpop.f32.mrb[8].mxu1 }
 0x67a   : > { %v3118_v26 = vpop.f32.mrb[9].mxu1 }
 0x67b   : > { %v1885_v40 = vpop.f32.mrb[10].mxu1  ;;  %v2575_v26 = vld [vmem:[%s5043_s14 + $0x10] sm:$0xff] }
 0x67c   : > { %v1889_v51 = vpack.c.bf16 %v1885_v40, %v1882_v25  ;;  %v3119_v33 = vpop.f32.mrb[11].mxu1 }
 0x67d   : > { %v2576_v33 = vld [vmem:[%s5043_s14 + $0x18] sm:$0xff] }
 0x67e   : > { %3125 = vmatmul.mubr.msk.bf16.vlgmr.msra.gmra.mrb[8].mxu0 %vm1912_vm9, %v1889_v51 }
 0x67f   : > { %3136 = vmatprep.mubr.msk.bf16.mxu0 %vm3898_vm7, %v3897_v2  ;;  %3135 = vmatpush3.bf16.msra.mxu0 %v2041_v31 }
 0x680   : > { %3152 = vmatprep.subr.bf16.mxu0 %v3897_v2 }
 0x681   : > { %v4800_v6 = vpop.f32.mrb[12].mxu1 }
 0x682   : > { %v3132_v55 = vpop.f32.mrb[13].mxu1 }
 0x683   : > { %v4802_v1 = vpop.f32.mrb[14].mxu1 }
 0x684   : > { %v3133_v58 = vpop.f32.mrb[15].mxu1 }
 0x685   : > { %v3223_v58 = vpack.c.bf16 %v2576_v33, %v2575_v26 }
 0x691   : > { %v2154_v46 = vpop.f32.mrb[16].mxu1 }
 0x692   : > { %v3150_v10 = vpop.f32.mrb[17].mxu1 }
 0x693   : > { %v2157_v60 = vpop.f32.mrb[18].mxu1 }
 0x694   : > { %v3151_v63 = vpop.f32.mrb[19].mxu1 }
 0x6a1   : > { %v2347_v52 = vpop.f32.mrb[20].mxu1 }
 0x6a2   : > { %v3174_v47 = vpop.f32.mrb[21].mxu1 }
 0x6a3   : > { %v2350_v24 = vpop.f32.mrb[22].mxu1  ;;  %v3000_v47 = vld [vmem:[#allocation19 + $0x2] ss:$0 sm:$0xff] }
 0x6a4   : > { %v3175_v21 = vpop.f32.mrb[23].mxu1 }
 0x6b1   : > { %v4902_v22 = vpop.f32.mrb[24].mxu1 }
 0x6b2   : > { %v3198_v25 = vpop.f32.mrb[25].mxu1 }
 0x6b3   : > { %v4913_v40 = vpop.f32.mrb[26].mxu1 }
 0x6b4   : > { %v3199_v55 = vpop.f32.mrb[27].mxu1 }
 0x751   : > { %v1954_v49 = vpop.f32.mrb[8].mxu0 }
 0x752   : > { %v1955_v53 = vadd.f32 %v2957_v27, %v1954_v49  ;;  %v3126_v19 = vpop.f32.mrb[9].mxu0 }
 0x753   : > { %v1957_v36 = vpop.f32.mrb[10].mxu0 }
 0x754   : > { %v2961_v35 = vmul.f32 -1.442695, %v1955_v53  ;;  %v1958_v28 = vadd.f32 %v2957_v27, %v1957_v36  ;;  %v3127_v29 = vpop.f32.mrb[11].mxu0 }
 0x755   : > { %v2992_v29 = vld [vmem:[#allocation19 + $0x1] ss:$0 sm:$0xff] }
 0x756   : > { %3498 = vpow2.f32 %v2961_v35  ;;  %v2962_v32 = vmul.f32 -1.442695, %v1958_v28 }
 0x758   : > { %3500 = vpow2.f32 %v2962_v32 }
 0x760   : > { %v3499_v56 = vpop.eup %3498 }
 0x761   : > { %v1967_v0 = vadd.f32 1.0, %v3499_v56 }
 0x762   : > { %v3501_v48 = vpop.eup %3500 }
 0x763   : > { %v1968_v9 = vadd.f32 1.0, %v3501_v48  ;;  %3502 = vrcp.f32 %v1967_v0 }
 0x765   : > { %3504 = vrcp.f32 %v1968_v9 }
 0x76d   : > { %v3503_v3 = vpop.eup %3502 }
 0x76f   : > { %v3505_v42 = vpop.eup %3504 }
 0x770   : > { %v1976_v8 = vpack.c.bf16 %v3505_v42, %v3503_v3 }
 0x772   : > { %3137 = vmatmul.mubr.msk.bf16.vlgmr.msra.gmra.mrb[12].mxu0 %vm2032_vm13, %v1976_v8 }
 0x773   : > { %3153 = vmatpush3.bf16.msra.mxu0 %v2188_v20  ;;  %3154 = vmatprep.mubr.msk.bf16.mxu0 %vm3898_vm7, %v3897_v2 }
 0x774   : > { %3158 = vmatprep.subr.bf16.mxu0 %v3897_v2 }
 0x77a   : > { %3155 = vmatmul.mubr.msk.bf16.vlgmr.msra.gmra.mrb[16].mxu0 %vm1546_vm5, %v4349_v18 }
 0x77b   : > { %3159 = vmatpush3.bf16.msra.mxu0 %v2237_v41  ;;  %3160 = vmatprep.mubr.msk.bf16.mxu0 %vm3898_vm7, %v3897_v2 }
 0x77c   : > { %3176 = vmatprep.subr.bf16.mxu0 %v3897_v2 }
 0x782   : > { %3161 = vmatmul.mubr.msk.bf16.vlgmr.msra.gmra.mrb[20].mxu0 %vm2032_vm13, %v1976_v8 }
 0x783   : > { %3177 = vmatpush3.bf16.msra.mxu0 %v2381_v45  ;;  %3178 = vmatprep.mubr.msk.bf16.mxu0 %vm3898_vm7, %v3897_v2 }
 0x784   : > { %3182 = vmatprep.subr.bf16.mxu0 %v3897_v2 }
 0x78a   : > { %3179 = vmatmul.mubr.msk.bf16.vlgmr.msra.gmra.mrb[24].mxu0 %vm1546_vm5, %v4349_v18  ;;  %v2573_v18 = vld [vmem:[%s5043_s14] sm:$0xff] }
 0x78b   : > { %3183 = vmatpush3.bf16.msra.mxu0 %v2430_v43  ;;  %3184 = vmatprep.mubr.msk.bf16.mxu0 %vm3898_vm7, %v3897_v2  ;;  %v2574_v2 = vld [vmem:[%s5043_s14 + $0x8] sm:$0xff]  ;;  %v3009_v43 = vld [vmem:[#allocation19 + $0x3] ss:$0 sm:$0xff] }
 0x78c   : > { %v3219_v51 = vpack.c.bf16 %v2574_v2, %v2573_v18  ;;  %v2553_v10 = vadd.f32 %v3009_v43, %v4902_v22 }
 0x78e   : > { %3220 = vmatprep.subr.bf16.mxu0 %v3219_v51 }
 0x792   : > { %3185 = vmatmul.mubr.msk.bf16.vlgmr.msra.gmra.mrb[28].mxu0 %vm2032_vm13, %v1976_v8 }
 0x793   : > { %3222 = vmatpush3.bf16.msra.mxu0 %v3219_v51 }
 0x794   : > { %3224 = vmatprep.subr.bf16.mxu0 %v3223_v58 }
 0x797   : > { %3226 = vmatpush3.bf16.msra.mxu0 %v3223_v58 }
 0x798   : > { %3228 = vmatprep.subr.bf16.mxu0 %v3227_v30 }
 0x79b   : > { %3230 = vmatpush3.bf16.msra.mxu0 %v3227_v30 }
 0x79c   : > { %3232 = vmatprep.subr.bf16.mxu0 %v3231_v7 }
 0x79f   : > { %3234 = vmatpush3.bf16.msra.mxu0 %v3231_v7 }
 0x845   : > { %v2077_v31 = vpop.f32.mrb[12].mxu0 }
 0x846   : > { %v2078_v34 = vadd.f32 %v2077_v31, %v4800_v6  ;;  %v3138_v23 = vpop.f32.mrb[13].mxu0 }
 0x847   : > { %v2080_v50 = vpop.f32.mrb[14].mxu0 }
 0x848   : > { %v2161_v54 = vadd.f32 %v2154_v46, %v2078_v34  ;;  %v2081_v44 = vadd.f32 %v2080_v50, %v4802_v1  ;;  %v3139_v37 = vpop.f32.mrb[15].mxu0 }
 0x84a   : > { %v2168_v11 = vadd.f32 %v2971_v57, %v2161_v54  ;;  %v2162_v39 = vadd.f32 %v2157_v60, %v2081_v44  ;;  %v2556_v60 = vadd.f32 %v3009_v43, %v4913_v40 }
 0x84c   : > { %v2972_v16 = vmul.f32 -1.442695, %v2168_v11  ;;  %v2169_v5 = vadd.f32 %v2971_v57, %v2162_v39  ;;  %v3015_v11 = vld [vmem:[#allocation4] ss:$0 sm:$0xff] }
 0x84d   : > { %v2224_v27 = vpop.f32.mrb[16].mxu0 }
 0x84e   : > { %3506 = vpow2.f32 %v2972_v16  ;;  %v2973_v49 = vmul.f32 -1.442695, %v2169_v5  ;;  %v3156_v53 = vpop.f32.mrb[17].mxu0 }
 0x84f   : > { %v2227_v19 = vpop.f32.mrb[18].mxu0 }
 0x850   : > { %3508 = vpow2.f32 %v2973_v49  ;;  %v3157_v36 = vpop.f32.mrb[19].mxu0 }
 0x855   : > { %v2273_v35 = vpop.f32.mrb[20].mxu0 }
 0x856   : > { %v2274_v6 = vadd.f32 %v2273_v35, %v2224_v27  ;;  %v3162_v28 = vpop.f32.mrb[21].mxu0 }
 0x857   : > { %v2276_v32 = vpop.f32.mrb[22].mxu0 }
 0x858   : > { %v3507_v56 = vpop.eup %3506  ;;  %v2354_v0 = vadd.f32 %v2347_v52, %v2274_v6  ;;  %v2277_v1 = vadd.f32 %v2276_v32, %v2227_v19  ;;  %v3163_v48 = vpop.f32.mrb[23].mxu0 }
 0x859   : > { %v2176_v9 = vadd.f32 1.0, %v3507_v56 }
 0x85a   : > { %v3509_v12 = vpop.eup %3508  ;;  %v2361_v3 = vadd.f32 %v2992_v29, %v2354_v0  ;;  %v2355_v42 = vadd.f32 %v2350_v24, %v2277_v1 }
 0x85b   : > { %3510 = vrcp.f32 %v2176_v9  ;;  %v2177_v8 = vadd.f32 1.0, %v3509_v12 }
 0x85c   : > { %v2993_v20 = vmul.f32 -1.442695, %v2361_v3  ;;  %v2362_v15 = vadd.f32 %v2992_v29, %v2355_v42 }
 0x85d   : > { %3512 = vrcp.f32 %v2177_v8  ;;  %v2417_v41 = vpop.f32.mrb[24].mxu0 }
 0x85e   : > { %3514 = vpow2.f32 %v2993_v20  ;;  %v2994_v4 = vmul.f32 -1.442695, %v2362_v15  ;;  %v3180_v45 = vpop.f32.mrb[25].mxu0 }
 0x85f   : > { %v2420_v13 = vpop.f32.mrb[26].mxu0 }
 0x860   : > { %3516 = vpow2.f32 %v2994_v4  ;;  %v3181_v46 = vpop.f32.mrb[27].mxu0 }
 0x865   : > { %v3511_v63 = vpop.eup %3510  ;;  %v2466_v52 = vpop.f32.mrb[28].mxu0 }
 0x866   : > { %v2559_v24 = vmul.f32 %v3511_v63, %v2553_v10  ;;  %v2467_v21 = vadd.f32 %v2466_v52, %v2417_v41  ;;  %v3186_v25 = vpop.f32.mrb[29].mxu0 }
 0x867   : > { %v3513_v18 = vpop.eup %3512  ;;  %v2469_v2 = vpop.f32.mrb[30].mxu0 }
 0x868   : > { %v3515_v26 = vpop.eup %3514  ;;  %v2478_v51 = vadd.f32 %v3000_v47, %v2467_v21  ;;  %v2560_v33 = vmul.f32 %v3513_v18, %v2556_v60  ;;  %v2470_v55 = vadd.f32 %v2469_v2, %v2420_v13  ;;  %v3187_v58 = vpop.f32.mrb[31].mxu0 }
 0x869   : > { %v2369_v17 = vadd.f32 1.0, %v3515_v26 }
 0x86a   : > { %v3517_v62 = vpop.eup %3516  ;;  %v2561_v30 = vadd.f32 %v2559_v24, %v2478_v51  ;;  %v2479_v61 = vadd.f32 %v3000_v47, %v2470_v55 }
 0x86b   : > { %v2370_v22 = vadd.f32 1.0, %v3517_v62 }
 0x86c   : > { %3518 = vtanh.f32 %v2561_v30  ;;  %v2562_v40 = vadd.f32 %v2560_v33, %v2479_v61 }
 0x86d   : > { %3520 = vrcp.f32 %v2369_v17 }
 0x86e   : > { %3522 = vtanh.f32 %v2562_v40 }
 0x86f   : > { %3524 = vrcp.f32 %v2370_v22 }
 0x876   : > { %v3519_v59 = vpop.eup %3518 }
 0x877   : > { %v3521_v7 = vpop.eup %3520  ;;  %v2565_v31 = vsub.f32 %v4825_v38, %v3519_v59 }
 0x878   : > { %v3523_v34 = vpop.eup %3522 }
 0x879   : > { %v2567_v23 = vmul.f32 %v3521_v7, %v2565_v31  ;;  %v2566_v57 = vsub.f32 %v4827_v14, %v3523_v34  ;;  %v3525_v50 = vpop.eup %3524 }
 0x87b   : > { %v2569_v54 = vadd.f32 %v3519_v59, %v2567_v23  ;;  %v2568_v44 = vmul.f32 %v3525_v50, %v2566_v57 }
 0x87d   : > { %2571 = vst.msk [vmem:[#allocation2] sm:$0xff] %vm2116_vm12, %v2569_v54  ;;  %3216 = vmatprep.mubr.msk.f32.mxu0 %vm2116_vm12, %v2569_v54  ;;  %v2570_v37 = vadd.f32 %v3523_v34, %v2568_v44 }
 0x87f   : > { %2572 = vst.msk [vmem:[#allocation2 + $0x8] sm:$0xff] %vm2116_vm12, %v2570_v37  ;;  %3217 = vmatmul.mubr.msk.f32.vlgmr.msra.gmra.mrb[32].mxu0 %vm2116_vm12, %v2570_v37 }
 0x952   : > { %v3218_v38 = vpop.f32.mrb[32].mxu0 }
 0x953   : > { %v2666_v39 = vadd.f32 %v3218_v38, %v3015_v11  ;;  %v2660_v16 = vpop.f32.mrb[33].mxu0 }
 0x954   : > { %v2661_v5 = vadd.f32 %v3015_v11, %v2660_v16 }
 0x955   : > { %2670 = vst.msk [vmem:[#allocation3 + $0x8] sm:$0xff] %vm878_vm3, %v2666_v39  ;;  %2672 = vst.msk [vmem:[%s4337_s23 + $0x8] sm:$0xff] %vm878_vm3, %v2666_v39 }
 0x956   : > { %2669 = vst.msk [vmem:[#allocation3] sm:$0xff] %vm878_vm3, %v2661_v5  ;;  %2671 = vst.msk [vmem:[%s4337_s23] sm:$0xff] %vm878_vm3, %v2661_v5 }
 0x957 PF: > { %s5044_s5 = sld [smem:[#allocation27_spill]]  ;;  %s5045_s26 = smov %s3860_s3 }
 0x958   : > { %s5046_s27 = smov %s3864_s28  ;;  %s5047_s3 = smov %s5050_s25 }
 0x959   : > { %s5048_s28 = smov %s5054_s20 }
 0x95d   : > { %s39_s29 = sadd.s32 1, %s5044_s5  }
 0x95e   : > { %p36_p4 = scmp.ge.s32.totalorder %s39_s29, 8  }
 0x960   :  { %38 = sbr.rel (!%p36_p4) target bundleno = 24 (0x18), region = 189 }
 0x967   :  { %2702 = vsyncpa [#allocation6], 1 }
 0x968   :  { %2704 = vsyncpa [#allocation6 + $0x1], 1 }
 0x969   :  { %2705 = vsyncpa [#allocation8], 1 }
 0x96a   :  { %2706 = vsyncpa [#allocation11], 1 }
 0x96b   :  { %2707 = vsyncpa [#allocation14], 1 }
 0x96c   :  { %2708 = vsyncpa [#allocation17], 1 }
 0x96d   :  { %2709 = vsyncpa [#allocation20], 1 }

</bundles_post_ra>
